<compile_context>
chip_gen: v6e
topology: v6e:2x2x1
jax: 0.10.0
libtpu: 0.0.40
codegen_flags: <defaults>
</compile_context>

<pallas_src>
import functools

import jax
import jax.numpy as jnp
from jax.experimental import pallas as pl
from jax.experimental.pallas import tpu as pltpu


# ----------------------------------------------------------------------------
# pallas_call helper: whole arrays as single VMEM blocks (all shapes here are
# tiny, so full-array blocks satisfy the (8,128) rule by equality).
# ----------------------------------------------------------------------------
def _full_call(kernel, out_shape, *args):
    def spec(shape):
        nd = len(shape)
        return pl.BlockSpec(shape, lambda i, nd=nd: (0,) * nd)

    if isinstance(out_shape, (tuple, list)):
        out_specs = tuple(spec(o.shape) for o in out_shape)
        out_shape_arg = tuple(out_shape)
    else:
        out_specs = spec(out_shape.shape)
        out_shape_arg = out_shape

    return pl.pallas_call(
        kernel,
        grid=(1,),
        in_specs=[spec(a.shape) for a in args],
        out_specs=out_specs,
        out_shape=out_shape_arg,
        compiler_params=pltpu.CompilerParams(dimension_semantics=("arbitrary",)),
    )(*args)


# ----------------------------------------------------------------------------
# in-kernel helpers (operate on values, not refs)
# ----------------------------------------------------------------------------
def _mm(a, b):
    return jnp.dot(a, b, preferred_element_type=jnp.float32)


def _lrelu(y):
    return jnp.where(y >= 0.0, y, 0.01 * y)


def _elu(y):
    return jnp.where(y > 0.0, y, jnp.exp(y) - 1.0)


def _edge_softmax(logits, dst_oh):
    # softmax of per-edge logits grouped by destination node (DGL edge_softmax)
    masked = jnp.where(dst_oh > 0.0, logits, jnp.float32(-1e30))      # (E,N)
    seg_max = jnp.max(masked, axis=0, keepdims=True)                  # (1,N)
    per_edge_max = jnp.sum(dst_oh * seg_max, axis=1, keepdims=True)   # (E,1)
    ex = jnp.exp(logits - per_edge_max)                               # (E,1)
    seg_sum = jnp.sum(dst_oh * ex, axis=0, keepdims=True)             # (1,N)
    den = jnp.sum(dst_oh * seg_sum, axis=1, keepdims=True)            # (E,1)
    return ex / den


def _gru_relu(x, h, wi, wh, bi, bh, G):
    # PyTorch nn.GRUCell with gates fused r|z|n into two wide matmuls, then ReLU
    gi = _mm(x, wi) + bi          # (rows, 3G)
    gh = _mm(h, wh) + bh          # (rows, 3G)
    r = jax.nn.sigmoid(gi[:, 0:G] + gh[:, 0:G])
    z = jax.nn.sigmoid(gi[:, G:2 * G] + gh[:, G:2 * G])
    n = jnp.tanh(gi[:, 2 * G:3 * G] + r * gh[:, 2 * G:3 * G])
    return jnp.maximum((1.0 - z) * n + z * h, 0.0)


# ----------------------------------------------------------------------------
# Fused module kernels
# ----------------------------------------------------------------------------
def _get_context_kernel(hv_ref, he_ref, src_oh_ref, dst_oh_ref, dst_oh_t_ref,
                        wpn, bpn, wpe1n, wpe1e, bpe1,
                        wpe2d, wpe2e, bpe2, wet, bet,
                        wi, wh, bi, bh, o_ref, *, G):
    hv = hv_ref[...]
    he = he_ref[...]
    src_oh = src_oh_ref[...]
    dst_oh = dst_oh_ref[...]

    hv_new = _lrelu(_mm(hv, wpn[...]) + bpn[...])                       # (N,G)
    h_src = _mm(src_oh, hv)                                             # gather src
    he1 = _lrelu(_mm(h_src, wpe1n[...]) + _mm(he, wpe1e[...]) + bpe1[...])
    hvnew_dst = _mm(dst_oh, hv_new)                                     # gather dst
    logits = _lrelu(_mm(hvnew_dst, wpe2d[...]) + _mm(he1, wpe2e[...]) + bpe2[...])
    a = _edge_softmax(logits, dst_oh)                                   # (E,1) in VMEM
    et = _mm(he1, wet[...]) + bet[...]                                  # edge_transform
    context = _elu(_mm(dst_oh_t_ref[...], a * et))                      # scatter-add
    o_ref[...] = _gru_relu(context, hv_new, wi[...], wh[...], bi[...], bh[...], G)


def _gnn_layer_kernel(hv_ref, sum_ref, src_oh_ref, dst_oh_ref, dst_oh_t_ref,
                      wped, wpes, bpe, wnode, bnode,
                      wi, wh, bi, bh, bn_scale, bn_shift,
                      o_ref, osum_ref, *, G):
    hv = hv_ref[...]
    src_oh = src_oh_ref[...]
    dst_oh = dst_oh_ref[...]

    h_dst = _mm(dst_oh, hv)
    h_src = _mm(src_oh, hv)
    logits = _lrelu(_mm(h_dst, wped[...]) + _mm(h_src, wpes[...]) + bpe[...])
    a = _edge_softmax(logits, dst_oh)
    hv_proj = _mm(hv, wnode[...]) + bnode[...]
    hv_proj_src = _mm(src_oh, hv_proj)
    context = _elu(_mm(dst_oh_t_ref[...], a * hv_proj_src))
    out = _gru_relu(context, hv, wi[...], wh[...], bi[...], bh[...], G)
    out = out * bn_scale[...] + bn_shift[...]          # folded BatchNorm (eval)
    o_ref[...] = out
    osum_ref[...] = sum_ref[...] + out                  # running sum of node feats


def _noncov_kernel(atom_ref, bond_ref, uv_oh_ref,
                   w1b, w1m, b1, w2, b2, w3, b3, bn_scale, bn_shift, o_ref):
    m = _mm(uv_oh_ref[...], atom_ref[...])                   # u_add_v message
    # bond feature width is statically 1 (in_dim = graph_feat + 1): use an
    # outer-product broadcast instead of a K=1 matmul.
    x = _lrelu(bond_ref[...] * w1b[...] + _mm(m, w1m[...]) + b1[...])
    x = _lrelu(_mm(x, w2[...]) + b2[...])
    x = _lrelu(_mm(x, w3[...]) + b3[...])
    o_ref[...] = x * bn_scale[...] + bn_shift[...]           # folded BatchNorm (eval)


def _readout_kernel(ef_ref, goh_ref, goh_t_ref, ww, bw, sum_ref, max_ref,
                    *, num_segments):
    ef = ef_ref[...]                                         # (E,F)
    goh = goh_ref[...]                                       # (E,S)
    F = ef.shape[1]
    w = jnp.tanh(_mm(ef, ww[...]) + bw[...])                 # (E,1) stays in VMEM
    sum_ref[...] = _mm(goh_t_ref[...], w * ef)               # weighted sum per graph

    # vectorized per-graph segment max accumulated in-register, one wide store
    row_iota = jax.lax.broadcasted_iota(jnp.int32, (num_segments, 1), 0)
    h_max = jnp.zeros((num_segments, F), jnp.float32)
    for s in range(num_segments):
        m = goh[:, s:s + 1]
        row = jnp.max(jnp.where(m > 0.0, ef, jnp.float32(-1e30)),
                      axis=0, keepdims=True)                 # (1,F)
        sel = (row_iota == s).astype(jnp.float32)            # (S,1)
        h_max = h_max + sel * row
    max_ref[...] = h_max


def _fc_kernel(*refs, n_extra_hidden):
    # refs: hs1, hm1, hs2, hm2,
    #       w_s1, w_m1, w_s2, w_m2, b1, scale1, shift1,
    #       [w, b, scale, shift] * n_extra_hidden,
    #       w_out, b_out, o_ref
    hs1, hm1, hs2, hm2 = (r[...] for r in refs[0:4])
    w_s1, w_m1, w_s2, w_m2, b1, sc1, sh1 = (r[...] for r in refs[4:11])
    h = _lrelu(_mm(hs1, w_s1) + _mm(hm1, w_m1) +
               _mm(hs2, w_s2) + _mm(hm2, w_m2) + b1)
    h = h * sc1 + sh1                                        # folded BatchNorm
    idx = 11
    for _ in range(n_extra_hidden):
        w, b, sc, sh = (r[...] for r in refs[idx:idx + 4])
        idx += 4
        h = _lrelu(_mm(h, w) + b)
        h = h * sc + sh
    w_out, b_out = refs[idx][...], refs[idx + 1][...]
    o_ref = refs[idx + 2]
    o_ref[...] = _mm(h, w_out) + b_out


# ----------------------------------------------------------------------------
# Module wrappers (one pallas_call each)
# ----------------------------------------------------------------------------
def fold_bn(bn, eps=1e-5):
    scale = bn["gamma"] / jnp.sqrt(bn["var"] + eps)
    shift = bn["beta"] - bn["mean"] * scale
    return scale, shift


def get_context(p, g, node_feats, edge_feats):
    G = p["proj_node"]["w"].shape[1]
    out = jax.ShapeDtypeStruct((node_feats.shape[0], G), jnp.float32)
    return _full_call(
        functools.partial(_get_context_kernel, G=G), out,
        node_feats, edge_feats, g["src_oh"], g["dst_oh"], g["dst_oh_T"],
        p["proj_node"]["w"], p["proj_node"]["b"],
        p["proj_edge1"]["w_n"], p["proj_edge1"]["w_e"], p["proj_edge1"]["b"],
        p["proj_edge2"]["w_d"], p["proj_edge2"]["w_e"], p["proj_edge2"]["b"],
        p["agru1_edge"]["w"], p["agru1_edge"]["b"],
        p["agru1_gru"]["wi"], p["agru1_gru"]["wh"],
        p["agru1_gru"]["bi"], p["agru1_gru"]["bh"])


def gnn_layer(p, g, node_feats, sum_feats):
    G = p["agru2_gru"]["wh"].shape[0]
    scale, shift = fold_bn(p["bn"])
    outs = (jax.ShapeDtypeStruct(node_feats.shape, jnp.float32),
            jax.ShapeDtypeStruct(node_feats.shape, jnp.float32))
    return _full_call(
        functools.partial(_gnn_layer_kernel, G=G), outs,
        node_feats, sum_feats, g["src_oh"], g["dst_oh"], g["dst_oh_T"],
        p["proj_edge"]["w_d"], p["proj_edge"]["w_s"], p["proj_edge"]["b"],
        p["agru2_node"]["w"], p["agru2_node"]["b"],
        p["agru2_gru"]["wi"], p["agru2_gru"]["wh"],
        p["agru2_gru"]["bi"], p["agru2_gru"]["bh"],
        scale, shift)


def cov_graph(p, g, node_feats, edge_feats):
    nf = get_context(p["get_context"], g, node_feats, edge_feats)
    s = nf
    for lp in p["gnn_layers"]:
        nf, s = gnn_layer(lp, g, nf, s)
    return s


def noncov_graph(p, g, atom_feats, bond_feats):
    scale, shift = fold_bn(p["bn"])
    out_dim = p["l3"]["w"].shape[1]
    out = jax.ShapeDtypeStruct((bond_feats.shape[0], out_dim), jnp.float32)
    return _full_call(
        _noncov_kernel, out,
        atom_feats, bond_feats, g["uv_oh"],
        p["l1"]["w_bond"], p["l1"]["w_m"], p["l1"]["b"],
        p["l2"]["w"], p["l2"]["b"], p["l3"]["w"], p["l3"]["b"],
        scale, shift)


def readout(p, g, edge_feats):
    S = g["num_graphs"]
    F = edge_feats.shape[1]
    outs = (jax.ShapeDtypeStruct((S, F), jnp.float32),
            jax.ShapeDtypeStruct((S, F), jnp.float32))
    return _full_call(
        functools.partial(_readout_kernel, num_segments=S), outs,
        edge_feats, g["graph_oh"], g["graph_oh_T"],
        p["weight"]["w"], p["weight"]["b"])


def fc_head(p, hs1, hm1, hs2, hm2):
    sc1, sh1 = fold_bn(p["bn_first"])
    args = [hs1, hm1, hs2, hm2,
            p["first"]["w_s1"], p["first"]["w_m1"],
            p["first"]["w_s2"], p["first"]["w_m2"],
            p["first"]["b"], sc1, sh1]
    for hl in p["hidden"]:
        sc, sh = fold_bn(hl["bn"])
        args += [hl["w"], hl["b"], sc, sh]
    args += [p["out"]["w"], p["out"]["b"]]
    out = jax.ShapeDtypeStruct((hs1.shape[0], p["out"]["w"].shape[1]), jnp.float32)
    return _full_call(
        functools.partial(_fc_kernel, n_extra_hidden=len(p["hidden"])), out, *args)


# ----------------------------------------------------------------------------
# Full forward: block-diagonal batching of the two graph pipelines, 5 kernels.
# ----------------------------------------------------------------------------
def batch_graphs(gA, gB, with_graph_ids):
    nA = gA["num_nodes"]
    num_nodes = nA + gB["num_nodes"]
    src = jnp.concatenate([gA["src"], gB["src"] + nA])
    dst = jnp.concatenate([gA["dst"], gB["dst"] + nA])
    src_oh = jax.nn.one_hot(src, num_nodes, dtype=jnp.float32)
    dst_oh = jax.nn.one_hot(dst, num_nodes, dtype=jnp.float32)
    g = {"src_oh": src_oh, "dst_oh": dst_oh, "dst_oh_T": dst_oh.T,
         "uv_oh": src_oh + dst_oh, "num_nodes": num_nodes}
    if with_graph_ids:
        ng = gA["num_graphs"] + gB["num_graphs"]
        gid = jnp.concatenate([gA["gid"], gB["gid"] + gA["num_graphs"]])
        goh = jax.nn.one_hot(gid, ng, dtype=jnp.float32)
        g["graph_oh"] = goh
        g["graph_oh_T"] = goh.T
        g["num_graphs"] = ng
    return g


def dti_predictor_forward(params, bg, bg3, bg2, bg4,
                          atom1, bond1, atom2, bond2, bond3, bond4):
    cov_b = batch_graphs(bg, bg2, with_graph_ids=False)
    non_b = batch_graphs(bg3, bg4, with_graph_ids=True)
    atom = jnp.concatenate([atom1, atom2], axis=0)
    bond_cov = jnp.concatenate([bond1, bond2], axis=0)
    bond_non = jnp.concatenate([bond3, bond4], axis=0)

    af = cov_graph(params["cov"], cov_b, atom, bond_cov)          # (2N, G)
    bf = noncov_graph(params["noncov"], non_b, af, bond_non)      # (2E, out_g3)
    h_sum, h_max = readout(params["readout"], non_b, bf)          # (2*Gr, out_g3) each
    gr = bg3["num_graphs"]
    return fc_head(params["fc"], h_sum[:gr], h_max[:gr], h_sum[gr:], h_max[gr:])


# ----------------------------------------------------------------------------
# Deterministic parameter construction (weights stored pre-split / pre-fused)
# ----------------------------------------------------------------------------
def _w(key, din, dout, scale=0.1):
    return jax.random.normal(key, (din, dout), jnp.float32) * scale


def _bias(key, dout, scale=0.01):
    return jax.random.normal(key, (1, dout), jnp.float32) * scale


def make_gru(key, in_dim, h_dim):
    k = jax.random.split(key, 4)
    return {"wi": _w(k[0], in_dim, 3 * h_dim), "wh": _w(k[1], h_dim, 3 * h_dim),
            "bi": _bias(k[2], 3 * h_dim), "bh": _bias(k[3], 3 * h_dim)}


def make_bn(dim):
    return {"gamma": jnp.ones((1, dim), jnp.float32),
            "beta": jnp.zeros((1, dim), jnp.float32),
            "mean": jnp.zeros((1, dim), jnp.float32),
            "var": jnp.ones((1, dim), jnp.float32)}


def init_params(key, nf, ef, num_layers, G, out_g3, d_fc, n_fc, n_tasks):
    keys = iter(jax.random.split(key, 128))
    nk = lambda: next(keys)
    cov = {
        "get_context": {
            "proj_node": {"w": _w(nk(), nf, G), "b": _bias(nk(), G)},
            "proj_edge1": {"w_n": _w(nk(), nf, G), "w_e": _w(nk(), ef, G),
                           "b": _bias(nk(), G)},
            "proj_edge2": {"w_d": _w(nk(), G, 1), "w_e": _w(nk(), G, 1),
                           "b": _bias(nk(), 1)},
            "agru1_edge": {"w": _w(nk(), G, G), "b": _bias(nk(), G)},
            "agru1_gru": make_gru(nk(), G, G),
        },
        "gnn_layers": [
            {"proj_edge": {"w_d": _w(nk(), G, 1), "w_s": _w(nk(), G, 1),
                           "b": _bias(nk(), 1)},
             "agru2_node": {"w": _w(nk(), G, G), "b": _bias(nk(), G)},
             "agru2_gru": make_gru(nk(), G, G),
             "bn": make_bn(G)}
            for _ in range(num_layers - 1)
        ],
    }
    noncov = {"l1": {"w_bond": _w(nk(), 1, out_g3), "w_m": _w(nk(), G, out_g3),
                     "b": _bias(nk(), out_g3)},
              "l2": {"w": _w(nk(), out_g3, out_g3), "b": _bias(nk(), out_g3)},
              "l3": {"w": _w(nk(), out_g3, out_g3), "b": _bias(nk(), out_g3)},
              "bn": make_bn(out_g3)}
    ro = {"weight": {"w": _w(nk(), out_g3, 1), "b": _bias(nk(), 1)}}
    # FC: Lin(4*out_g3 -> d_fc)+LReLU+BN, then (n_fc-1) x [Lin(d_fc->d_fc)+LReLU+BN],
    # then Lin(d_fc -> n_tasks).  First weight is split into sum1|max1|sum2|max2
    # input blocks to avoid the readout concatenations.
    fc_p = {"first": {"w_s1": _w(nk(), out_g3, d_fc), "w_m1": _w(nk(), out_g3, d_fc),
                      "w_s2": _w(nk(), out_g3, d_fc), "w_m2": _w(nk(), out_g3, d_fc),
                      "b": _bias(nk(), d_fc)},
            "bn_first": make_bn(d_fc),
            "hidden": [{"w": _w(nk(), d_fc, d_fc), "b": _bias(nk(), d_fc),
                        "bn": make_bn(d_fc)} for _ in range(n_fc - 1)],
            "out": {"w": _w(nk(), d_fc, n_tasks), "b": _bias(nk(), n_tasks)}}
    return {"cov": cov, "noncov": noncov, "readout": ro, "fc": fc_p}


# ----------------------------------------------------------------------------
# Graph construction (index-based; one-hots are built at batching time)
# ----------------------------------------------------------------------------
def ring_edges(n_per_graph, n_graphs, step):
    src, dst, gid = [], [], []
    for g in range(n_graphs):
        base = g * n_per_graph
        for i in range(n_per_graph):
            u = base + i
            v = base + (i + step) % n_per_graph
            src += [u, v]
            dst += [v, u]
            gid += [g, g]
    return (jnp.array(src, jnp.int32), jnp.array(dst, jnp.int32),
            jnp.array(gid, jnp.int32))


def make_graph(src, dst, gid, num_nodes, num_graphs):
    return {"src": src, "dst": dst, "gid": gid,
            "num_nodes": num_nodes, "num_graphs": num_graphs}


# ----------------------------------------------------------------------------
if __name__ == "__main__":
    node_feat_size, edge_feat_size = 8, 4
    num_layers, graph_feat_size = 2, 32
    outdim_g3, d_FC_layer, n_FC_layer, n_tasks = 32, 32, 2, 1
    num_graphs, nodes_per_graph = 2, 8
    n_nodes = num_graphs * nodes_per_graph

    key = jax.random.PRNGKey(0)
    k_par, k_a1, k_b1, k_a2, k_b2, k_b3, k_b4 = jax.random.split(key, 7)

    params = init_params(k_par, node_feat_size, edge_feat_size, num_layers,
                         graph_feat_size, outdim_g3, d_FC_layer, n_FC_layer,
                         n_tasks)

    s1, d1, g1 = ring_edges(nodes_per_graph, num_graphs, 1)
    s2, d2, g2 = ring_edges(nodes_per_graph, num_graphs, 2)
    s3, d3, g3 = ring_edges(nodes_per_graph, num_graphs, 3)
    s4, d4, g4 = ring_edges(nodes_per_graph, num_graphs, 3)

    bg = make_graph(s1, d1, g1, n_nodes, num_graphs)
    bg2 = make_graph(s2, d2, g2, n_nodes, num_graphs)
    bg3 = make_graph(s3, d3, g3, n_nodes, num_graphs)
    bg4 = make_graph(s4, d4, g4, n_nodes, num_graphs)

    E_cov, E_non = s1.shape[0], s3.shape[0]
    atom1 = jax.random.normal(k_a1, (n_nodes, node_feat_size), jnp.float32)
    bond1 = jax.random.normal(k_b1, (E_cov, edge_feat_size), jnp.float32)
    atom2 = jax.random.normal(k_a2, (n_nodes, node_feat_size), jnp.float32)
    bond2 = jax.random.normal(k_b2, (E_cov, edge_feat_size), jnp.float32)
    bond3 = jax.random.normal(k_b3, (E_non, 1), jnp.float32)
    bond4 = jax.random.normal(k_b4, (E_non, 1), jnp.float32)

    out = dti_predictor_forward(params, bg, bg3, bg2, bg4,
                                atom1, bond1, atom2, bond2, bond3, bond4)
    out = jax.block_until_ready(out)
    assert out.shape == (num_graphs, n_tasks)
    print("KERNEL_OK")
</pallas_src>

<mosaic_0001>
module attributes {stable_mosaic.version = 11 : i64} {
  func.func @_get_context_kernel(%arg0: i32, %arg1: memref<32x8xf32, #tpu.memory_space<vmem>>, %arg2: memref<64x4xf32, #tpu.memory_space<vmem>>, %arg3: memref<64x32xf32, #tpu.memory_space<vmem>>, %arg4: memref<64x32xf32, #tpu.memory_space<vmem>>, %arg5: memref<32x64xf32, #tpu.memory_space<vmem>>, %arg6: memref<8x32xf32, #tpu.memory_space<vmem>>, %arg7: memref<1x32xf32, #tpu.memory_space<vmem>>, %arg8: memref<8x32xf32, #tpu.memory_space<vmem>>, %arg9: memref<4x32xf32, #tpu.memory_space<vmem>>, %arg10: memref<1x32xf32, #tpu.memory_space<vmem>>, %arg11: memref<32x1xf32, #tpu.memory_space<vmem>>, %arg12: memref<32x1xf32, #tpu.memory_space<vmem>>, %arg13: memref<1x1xf32, #tpu.memory_space<vmem>>, %arg14: memref<32x32xf32, #tpu.memory_space<vmem>>, %arg15: memref<1x32xf32, #tpu.memory_space<vmem>>, %arg16: memref<32x96xf32, #tpu.memory_space<vmem>>, %arg17: memref<32x96xf32, #tpu.memory_space<vmem>>, %arg18: memref<1x96xf32, #tpu.memory_space<vmem>>, %arg19: memref<1x96xf32, #tpu.memory_space<vmem>>, %arg20: memref<32x32xf32, #tpu.memory_space<vmem>>) attributes {dimension_semantics = [#tpu.dimension_semantics<arbitrary>], iteration_bounds = array<i64: 1>, scalar_prefetch = 0 : i64, scratch_operands = 0 : i64, tpu.core_type = #tpu.core_type<tc>, window_params = [{pipeline_mode = #tpu.pipeline_mode<synchronous>, transform_indices = @transform_0, window_bounds = array<i64: 32, 8>}, {pipeline_mode = #tpu.pipeline_mode<synchronous>, transform_indices = @transform_1, window_bounds = array<i64: 64, 4>}, {pipeline_mode = #tpu.pipeline_mode<synchronous>, transform_indices = @transform_2, window_bounds = array<i64: 64, 32>}, {pipeline_mode = #tpu.pipeline_mode<synchronous>, transform_indices = @transform_3, window_bounds = array<i64: 64, 32>}, {pipeline_mode = #tpu.pipeline_mode<synchronous>, transform_indices = @transform_4, window_bounds = array<i64: 32, 64>}, {pipeline_mode = #tpu.pipeline_mode<synchronous>, transform_indices = @transform_5, window_bounds = array<i64: 8, 32>}, {pipeline_mode = #tpu.pipeline_mode<synchronous>, transform_indices = @transform_6, window_bounds = array<i64: 1, 32>}, {pipeline_mode = #tpu.pipeline_mode<synchronous>, transform_indices = @transform_7, window_bounds = array<i64: 8, 32>}, {pipeline_mode = #tpu.pipeline_mode<synchronous>, transform_indices = @transform_8, window_bounds = array<i64: 4, 32>}, {pipeline_mode = #tpu.pipeline_mode<synchronous>, transform_indices = @transform_9, window_bounds = array<i64: 1, 32>}, {pipeline_mode = #tpu.pipeline_mode<synchronous>, transform_indices = @transform_10, window_bounds = array<i64: 32, 1>}, {pipeline_mode = #tpu.pipeline_mode<synchronous>, transform_indices = @transform_11, window_bounds = array<i64: 32, 1>}, {pipeline_mode = #tpu.pipeline_mode<synchronous>, transform_indices = @transform_12, window_bounds = array<i64: 1, 1>}, {pipeline_mode = #tpu.pipeline_mode<synchronous>, transform_indices = @transform_13, window_bounds = array<i64: 32, 32>}, {pipeline_mode = #tpu.pipeline_mode<synchronous>, transform_indices = @transform_14, window_bounds = array<i64: 1, 32>}, {pipeline_mode = #tpu.pipeline_mode<synchronous>, transform_indices = @transform_15, window_bounds = array<i64: 32, 96>}, {pipeline_mode = #tpu.pipeline_mode<synchronous>, transform_indices = @transform_16, window_bounds = array<i64: 32, 96>}, {pipeline_mode = #tpu.pipeline_mode<synchronous>, transform_indices = @transform_17, window_bounds = array<i64: 1, 96>}, {pipeline_mode = #tpu.pipeline_mode<synchronous>, transform_indices = @transform_18, window_bounds = array<i64: 1, 96>}, {pipeline_mode = #tpu.pipeline_mode<synchronous>, transform_indices = @transform_19, window_bounds = array<i64: 32, 32>}]} {
    %c0 = arith.constant 0 : index
    %c0_0 = arith.constant 0 : index
    %0 = vector.load %arg1[%c0, %c0_0] : memref<32x8xf32, #tpu.memory_space<vmem>>, vector<32x8xf32>
    %c0_1 = arith.constant 0 : index
    %c0_2 = arith.constant 0 : index
    %1 = vector.load %arg2[%c0_1, %c0_2] : memref<64x4xf32, #tpu.memory_space<vmem>>, vector<64x4xf32>
    %c0_3 = arith.constant 0 : index
    %c0_4 = arith.constant 0 : index
    %2 = vector.load %arg3[%c0_3, %c0_4] : memref<64x32xf32, #tpu.memory_space<vmem>>, vector<64x32xf32>
    %c0_5 = arith.constant 0 : index
    %c0_6 = arith.constant 0 : index
    %3 = vector.load %arg4[%c0_5, %c0_6] : memref<64x32xf32, #tpu.memory_space<vmem>>, vector<64x32xf32>
    %c0_7 = arith.constant 0 : index
    %c0_8 = arith.constant 0 : index
    %4 = vector.load %arg6[%c0_7, %c0_8] : memref<8x32xf32, #tpu.memory_space<vmem>>, vector<8x32xf32>
    %cst = arith.constant dense<0.000000e+00> : vector<32x32xf32>
    %5 = tpu.matmul %0, %4, %cst {dimension_numbers = #tpu.dot_dimension_numbers<[1], [0], [0], [1], [0, 0, 1, 1], [], []>} : vector<32x8xf32>, vector<8x32xf32>, vector<32x32xf32> -> vector<32x32xf32>
    %c0_9 = arith.constant 0 : index
    %c0_10 = arith.constant 0 : index
    %6 = vector.load %arg7[%c0_9, %c0_10] : memref<1x32xf32, #tpu.memory_space<vmem>>, vector<1x32xf32>
    %7 = vector.broadcast %6 : vector<1x32xf32> to vector<32x32xf32>
    %8 = arith.addf %5, %7 : vector<32x32xf32>
    %cst_11 = arith.constant 0.000000e+00 : f32
    %9 = vector.broadcast %cst_11 : f32 to vector<32x32xf32>
    %10 = arith.cmpf oge, %8, %9 : vector<32x32xf32>
    %cst_12 = arith.constant 0.00999999977 : f32
    %11 = vector.broadcast %cst_12 : f32 to vector<32x32xf32>
    %12 = arith.mulf %11, %8 : vector<32x32xf32>
    %13 = arith.select %10, %8, %12 : vector<32x32xi1>, vector<32x32xf32>
    %cst_13 = arith.constant dense<0.000000e+00> : vector<64x8xf32>
    %14 = tpu.matmul %2, %0, %cst_13 {dimension_numbers = #tpu.dot_dimension_numbers<[1], [0], [0], [1], [0, 0, 1, 1], [], []>} : vector<64x32xf32>, vector<32x8xf32>, vector<64x8xf32> -> vector<64x8xf32>
    %c0_14 = arith.constant 0 : index
    %c0_15 = arith.constant 0 : index
    %15 = vector.load %arg8[%c0_14, %c0_15] : memref<8x32xf32, #tpu.memory_space<vmem>>, vector<8x32xf32>
    %cst_16 = arith.constant dense<0.000000e+00> : vector<64x32xf32>
    %16 = tpu.matmul %14, %15, %cst_16 {dimension_numbers = #tpu.dot_dimension_numbers<[1], [0], [0], [1], [0, 0, 1, 1], [], []>} : vector<64x8xf32>, vector<8x32xf32>, vector<64x32xf32> -> vector<64x32xf32>
    %c0_17 = arith.constant 0 : index
    %c0_18 = arith.constant 0 : index
    %17 = vector.load %arg9[%c0_17, %c0_18] : memref<4x32xf32, #tpu.memory_space<vmem>>, vector<4x32xf32>
    %cst_19 = arith.constant dense<0.000000e+00> : vector<64x32xf32>
    %18 = tpu.matmul %1, %17, %cst_19 {dimension_numbers = #tpu.dot_dimension_numbers<[1], [0], [0], [1], [0, 0, 1, 1], [], []>} : vector<64x4xf32>, vector<4x32xf32>, vector<64x32xf32> -> vector<64x32xf32>
    %19 = arith.addf %16, %18 : vector<64x32xf32>
    %c0_20 = arith.constant 0 : index
    %c0_21 = arith.constant 0 : index
    %20 = vector.load %arg10[%c0_20, %c0_21] : memref<1x32xf32, #tpu.memory_space<vmem>>, vector<1x32xf32>
    %21 = vector.broadcast %20 : vector<1x32xf32> to vector<64x32xf32>
    %22 = arith.addf %19, %21 : vector<64x32xf32>
    %cst_22 = arith.constant 0.000000e+00 : f32
    %23 = vector.broadcast %cst_22 : f32 to vector<64x32xf32>
    %24 = arith.cmpf oge, %22, %23 : vector<64x32xf32>
    %cst_23 = arith.constant 0.00999999977 : f32
    %25 = vector.broadcast %cst_23 : f32 to vector<64x32xf32>
    %26 = arith.mulf %25, %22 : vector<64x32xf32>
    %27 = arith.select %24, %22, %26 : vector<64x32xi1>, vector<64x32xf32>
    %cst_24 = arith.constant dense<0.000000e+00> : vector<64x32xf32>
    %28 = tpu.matmul %3, %13, %cst_24 {dimension_numbers = #tpu.dot_dimension_numbers<[1], [0], [0], [1], [0, 0, 1, 1], [], []>} : vector<64x32xf32>, vector<32x32xf32>, vector<64x32xf32> -> vector<64x32xf32>
    %c0_25 = arith.constant 0 : index
    %c0_26 = arith.constant 0 : index
    %29 = vector.load %arg11[%c0_25, %c0_26] : memref<32x1xf32, #tpu.memory_space<vmem>>, vector<32x1xf32>
    %cst_27 = arith.constant dense<0.000000e+00> : vector<64x1xf32>
    %30 = tpu.matmul %28, %29, %cst_27 {dimension_numbers = #tpu.dot_dimension_numbers<[1], [0], [0], [1], [0, 0, 1, 1], [], []>} : vector<64x32xf32>, vector<32x1xf32>, vector<64x1xf32> -> vector<64x1xf32>
    %c0_28 = arith.constant 0 : index
    %c0_29 = arith.constant 0 : index
    %31 = vector.load %arg12[%c0_28, %c0_29] : memref<32x1xf32, #tpu.memory_space<vmem>>, vector<32x1xf32>
    %cst_30 = arith.constant dense<0.000000e+00> : vector<64x1xf32>
    %32 = tpu.matmul %27, %31, %cst_30 {dimension_numbers = #tpu.dot_dimension_numbers<[1], [0], [0], [1], [0, 0, 1, 1], [], []>} : vector<64x32xf32>, vector<32x1xf32>, vector<64x1xf32> -> vector<64x1xf32>
    %33 = arith.addf %30, %32 : vector<64x1xf32>
    %c0_31 = arith.constant 0 : index
    %c0_32 = arith.constant 0 : index
    %34 = vector.load %arg13[%c0_31, %c0_32] : memref<1x1xf32, #tpu.memory_space<vmem>>, vector<1x1xf32>
    %35 = vector.broadcast %34 : vector<1x1xf32> to vector<64x1xf32>
    %36 = arith.addf %33, %35 : vector<64x1xf32>
    %cst_33 = arith.constant 0.000000e+00 : f32
    %37 = vector.broadcast %cst_33 : f32 to vector<64x1xf32>
    %38 = arith.cmpf oge, %36, %37 : vector<64x1xf32>
    %cst_34 = arith.constant 0.00999999977 : f32
    %39 = vector.broadcast %cst_34 : f32 to vector<64x1xf32>
    %40 = arith.mulf %39, %36 : vector<64x1xf32>
    %41 = arith.select %38, %36, %40 : vector<64x1xi1>, vector<64x1xf32>
    %cst_35 = arith.constant 0.000000e+00 : f32
    %42 = vector.broadcast %cst_35 : f32 to vector<64x32xf32>
    %43 = arith.cmpf ogt, %3, %42 : vector<64x32xf32>
    %cst_36 = arith.constant -1.000000e+30 : f32
    %44 = vector.shape_cast %41 : vector<64x1xf32> to vector<64x1xf32>
    %45 = vector.broadcast %44 : vector<64x1xf32> to vector<64x32xf32>
    %46 = vector.broadcast %cst_36 : f32 to vector<64x32xf32>
    %47 = arith.select %43, %45, %46 : vector<64x32xi1>, vector<64x32xf32>
    %cst_37 = arith.constant dense<0xFF800000> : vector<32xf32>
    %48 = vector.multi_reduction <maximumf>, %47, %cst_37 [0] : vector<64x32xf32> to vector<32xf32>
    %49 = vector.shape_cast %48 : vector<32xf32> to vector<1x32xf32>
    %50 = vector.broadcast %49 : vector<1x32xf32> to vector<64x32xf32>
    %51 = arith.mulf %3, %50 : vector<64x32xf32>
    %cst_38 = arith.constant dense<0.000000e+00> : vector<64xf32>
    %52 = vector.multi_reduction <add>, %51, %cst_38 [1] : vector<64x32xf32> to vector<64xf32>
    %53 = vector.shape_cast %52 : vector<64xf32> to vector<64x1xf32>
    %54 = arith.subf %41, %53 : vector<64x1xf32>
    %55 = math.exp %54 : vector<64x1xf32>
    %56 = vector.broadcast %55 : vector<64x1xf32> to vector<64x32xf32>
    %57 = arith.mulf %3, %56 : vector<64x32xf32>
    %cst_39 = arith.constant dense<0.000000e+00> : vector<32xf32>
    %58 = vector.multi_reduction <add>, %57, %cst_39 [0] : vector<64x32xf32> to vector<32xf32>
    %59 = vector.shape_cast %58 : vector<32xf32> to vector<1x32xf32>
    %60 = vector.broadcast %59 : vector<1x32xf32> to vector<64x32xf32>
    %61 = arith.mulf %3, %60 : vector<64x32xf32>
    %cst_40 = arith.constant dense<0.000000e+00> : vector<64xf32>
    %62 = vector.multi_reduction <add>, %61, %cst_40 [1] : vector<64x32xf32> to vector<64xf32>
    %63 = vector.shape_cast %62 : vector<64xf32> to vector<64x1xf32>
    %64 = arith.divf %55, %63 : vector<64x1xf32>
    %c0_41 = arith.constant 0 : index
    %c0_42 = arith.constant 0 : index
    %65 = vector.load %arg14[%c0_41, %c0_42] : memref<32x32xf32, #tpu.memory_space<vmem>>, vector<32x32xf32>
    %cst_43 = arith.constant dense<0.000000e+00> : vector<64x32xf32>
    %66 = tpu.matmul %27, %65, %cst_43 {dimension_numbers = #tpu.dot_dimension_numbers<[1], [0], [0], [1], [0, 0, 1, 1], [], []>} : vector<64x32xf32>, vector<32x32xf32>, vector<64x32xf32> -> vector<64x32xf32>
    %c0_44 = arith.constant 0 : index
    %c0_45 = arith.constant 0 : index
    %67 = vector.load %arg15[%c0_44, %c0_45] : memref<1x32xf32, #tpu.memory_space<vmem>>, vector<1x32xf32>
    %68 = vector.broadcast %67 : vector<1x32xf32> to vector<64x32xf32>
    %69 = arith.addf %66, %68 : vector<64x32xf32>
    %c0_46 = arith.constant 0 : index
    %c0_47 = arith.constant 0 : index
    %70 = vector.load %arg5[%c0_46, %c0_47] : memref<32x64xf32, #tpu.memory_space<vmem>>, vector<32x64xf32>
    %71 = vector.broadcast %64 : vector<64x1xf32> to vector<64x32xf32>
    %72 = arith.mulf %71, %69 : vector<64x32xf32>
    %cst_48 = arith.constant dense<0.000000e+00> : vector<32x32xf32>
    %73 = tpu.matmul %70, %72, %cst_48 {dimension_numbers = #tpu.dot_dimension_numbers<[1], [0], [0], [1], [0, 0, 1, 1], [], []>} : vector<32x64xf32>, vector<64x32xf32>, vector<32x32xf32> -> vector<32x32xf32>
    %cst_49 = arith.constant 0.000000e+00 : f32
    %74 = vector.broadcast %cst_49 : f32 to vector<32x32xf32>
    %75 = arith.cmpf ogt, %73, %74 : vector<32x32xf32>
    %76 = math.exp %73 : vector<32x32xf32>
    %cst_50 = arith.constant 1.000000e+00 : f32
    %77 = vector.broadcast %cst_50 : f32 to vector<32x32xf32>
    %78 = arith.subf %76, %77 : vector<32x32xf32>
    %79 = arith.select %75, %73, %78 : vector<32x32xi1>, vector<32x32xf32>
    %c0_51 = arith.constant 0 : index
    %c0_52 = arith.constant 0 : index
    %80 = vector.load %arg16[%c0_51, %c0_52] : memref<32x96xf32, #tpu.memory_space<vmem>>, vector<32x96xf32>
    %c0_53 = arith.constant 0 : index
    %c0_54 = arith.constant 0 : index
    %81 = vector.load %arg17[%c0_53, %c0_54] : memref<32x96xf32, #tpu.memory_space<vmem>>, vector<32x96xf32>
    %c0_55 = arith.constant 0 : index
    %c0_56 = arith.constant 0 : index
    %82 = vector.load %arg18[%c0_55, %c0_56] : memref<1x96xf32, #tpu.memory_space<vmem>>, vector<1x96xf32>
    %c0_57 = arith.constant 0 : index
    %c0_58 = arith.constant 0 : index
    %83 = vector.load %arg19[%c0_57, %c0_58] : memref<1x96xf32, #tpu.memory_space<vmem>>, vector<1x96xf32>
    %cst_59 = arith.constant dense<0.000000e+00> : vector<32x96xf32>
    %84 = tpu.matmul %79, %80, %cst_59 {dimension_numbers = #tpu.dot_dimension_numbers<[1], [0], [0], [1], [0, 0, 1, 1], [], []>} : vector<32x32xf32>, vector<32x96xf32>, vector<32x96xf32> -> vector<32x96xf32>
    %85 = vector.broadcast %82 : vector<1x96xf32> to vector<32x96xf32>
    %86 = arith.addf %84, %85 : vector<32x96xf32>
    %cst_60 = arith.constant dense<0.000000e+00> : vector<32x96xf32>
    %87 = tpu.matmul %13, %81, %cst_60 {dimension_numbers = #tpu.dot_dimension_numbers<[1], [0], [0], [1], [0, 0, 1, 1], [], []>} : vector<32x32xf32>, vector<32x96xf32>, vector<32x96xf32> -> vector<32x96xf32>
    %88 = vector.broadcast %83 : vector<1x96xf32> to vector<32x96xf32>
    %89 = arith.addf %87, %88 : vector<32x96xf32>
    %90 = vector.extract_strided_slice %86 {offsets = [0, 0], sizes = [32, 32], strides = [1, 1]} : vector<32x96xf32> to vector<32x32xf32>
    %91 = vector.extract_strided_slice %89 {offsets = [0, 0], sizes = [32, 32], strides = [1, 1]} : vector<32x96xf32> to vector<32x32xf32>
    %92 = arith.addf %90, %91 : vector<32x32xf32>
    %93 = arith.negf %92 : vector<32x32xf32>
    %94 = math.exp %93 : vector<32x32xf32>
    %cst_61 = arith.constant 1.000000e+00 : f32
    %95 = vector.broadcast %cst_61 : f32 to vector<32x32xf32>
    %96 = arith.addf %95, %94 : vector<32x32xf32>
    %97 = arith.divf %95, %96 : vector<32x32xf32>
    %98 = vector.extract_strided_slice %86 {offsets = [0, 32], sizes = [32, 32], strides = [1, 1]} : vector<32x96xf32> to vector<32x32xf32>
    %99 = vector.extract_strided_slice %89 {offsets = [0, 32], sizes = [32, 32], strides = [1, 1]} : vector<32x96xf32> to vector<32x32xf32>
    %100 = arith.addf %98, %99 : vector<32x32xf32>
    %101 = arith.negf %100 : vector<32x32xf32>
    %102 = math.exp %101 : vector<32x32xf32>
    %cst_62 = arith.constant 1.000000e+00 : f32
    %103 = vector.broadcast %cst_62 : f32 to vector<32x32xf32>
    %104 = arith.addf %103, %102 : vector<32x32xf32>
    %105 = arith.divf %103, %104 : vector<32x32xf32>
    %106 = vector.extract_strided_slice %86 {offsets = [0, 64], sizes = [32, 32], strides = [1, 1]} : vector<32x96xf32> to vector<32x32xf32>
    %107 = vector.extract_strided_slice %89 {offsets = [0, 64], sizes = [32, 32], strides = [1, 1]} : vector<32x96xf32> to vector<32x32xf32>
    %108 = arith.mulf %97, %107 : vector<32x32xf32>
    %109 = arith.addf %106, %108 : vector<32x32xf32>
    %110 = math.tanh %109 : vector<32x32xf32>
    %cst_63 = arith.constant 1.000000e+00 : f32
    %111 = vector.broadcast %cst_63 : f32 to vector<32x32xf32>
    %112 = arith.subf %111, %105 : vector<32x32xf32>
    %113 = arith.mulf %112, %110 : vector<32x32xf32>
    %114 = arith.mulf %105, %13 : vector<32x32xf32>
    %115 = arith.addf %113, %114 : vector<32x32xf32>
    %cst_64 = arith.constant 0.000000e+00 : f32
    %116 = vector.broadcast %cst_64 : f32 to vector<32x32xf32>
    %117 = arith.maximumf %115, %116 : vector<32x32xf32>
    %c0_65 = arith.constant 0 : index
    %c0_66 = arith.constant 0 : index
    %118 = vector.load %arg20[%c0_65, %c0_66] : memref<32x32xf32, #tpu.memory_space<vmem>>, vector<32x32xf32>
    tpu.vector_store %arg20[%c0_65, %c0_66], %117 {strides = array<i32>} : memref<32x32xf32, #tpu.memory_space<vmem>>, vector<32x32xf32>,
    return
  }
  func.func @transform_0(%arg0: i32) -> (i32, i32) {
    %c0_i32 = arith.constant 0 : i32
    %c0_i32_0 = arith.constant 0 : i32
    %c0_i32_1 = arith.constant 0 : i32
    return %c0_i32, %c0_i32_0 : i32, i32
  }
  func.func @transform_1(%arg0: i32) -> (i32, i32) {
    %c0_i32 = arith.constant 0 : i32
    %c0_i32_0 = arith.constant 0 : i32
    %c0_i32_1 = arith.constant 0 : i32
    return %c0_i32, %c0_i32_0 : i32, i32
  }
  func.func @transform_2(%arg0: i32) -> (i32, i32) {
    %c0_i32 = arith.constant 0 : i32
    %c0_i32_0 = arith.constant 0 : i32
    %c0_i32_1 = arith.constant 0 : i32
    return %c0_i32, %c0_i32_0 : i32, i32
  }
  func.func @transform_3(%arg0: i32) -> (i32, i32) {
    %c0_i32 = arith.constant 0 : i32
    %c0_i32_0 = arith.constant 0 : i32
    %c0_i32_1 = arith.constant 0 : i32
    return %c0_i32, %c0_i32_0 : i32, i32
  }
  func.func @transform_4(%arg0: i32) -> (i32, i32) {
    %c0_i32 = arith.constant 0 : i32
    %c0_i32_0 = arith.constant 0 : i32
    %c0_i32_1 = arith.constant 0 : i32
    return %c0_i32, %c0_i32_0 : i32, i32
  }
  func.func @transform_5(%arg0: i32) -> (i32, i32) {
    %c0_i32 = arith.constant 0 : i32
    %c0_i32_0 = arith.constant 0 : i32
    %c0_i32_1 = arith.constant 0 : i32
    return %c0_i32, %c0_i32_0 : i32, i32
  }
  func.func @transform_6(%arg0: i32) -> (i32, i32) {
    %c0_i32 = arith.constant 0 : i32
    %c0_i32_0 = arith.constant 0 : i32
    %c0_i32_1 = arith.constant 0 : i32
    return %c0_i32, %c0_i32_0 : i32, i32
  }
  func.func @transform_7(%arg0: i32) -> (i32, i32) {
    %c0_i32 = arith.constant 0 : i32
    %c0_i32_0 = arith.constant 0 : i32
    %c0_i32_1 = arith.constant 0 : i32
    return %c0_i32, %c0_i32_0 : i32, i32
  }
  func.func @transform_8(%arg0: i32) -> (i32, i32) {
    %c0_i32 = arith.constant 0 : i32
    %c0_i32_0 = arith.constant 0 : i32
    %c0_i32_1 = arith.constant 0 : i32
    return %c0_i32, %c0_i32_0 : i32, i32
  }
  func.func @transform_9(%arg0: i32) -> (i32, i32) {
    %c0_i32 = arith.constant 0 : i32
    %c0_i32_0 = arith.constant 0 : i32
    %c0_i32_1 = arith.constant 0 : i32
    return %c0_i32, %c0_i32_0 : i32, i32
  }
  func.func @transform_10(%arg0: i32) -> (i32, i32) {
    %c0_i32 = arith.constant 0 : i32
    %c0_i32_0 = arith.constant 0 : i32
    %c0_i32_1 = arith.constant 0 : i32
    return %c0_i32, %c0_i32_0 : i32, i32
  }
  func.func @transform_11(%arg0: i32) -> (i32, i32) {
    %c0_i32 = arith.constant 0 : i32
    %c0_i32_0 = arith.constant 0 : i32
    %c0_i32_1 = arith.constant 0 : i32
    return %c0_i32, %c0_i32_0 : i32, i32
  }
  func.func @transform_12(%arg0: i32) -> (i32, i32) {
    %c0_i32 = arith.constant 0 : i32
    %c0_i32_0 = arith.constant 0 : i32
    %c0_i32_1 = arith.constant 0 : i32
    return %c0_i32, %c0_i32_0 : i32, i32
  }
  func.func @transform_13(%arg0: i32) -> (i32, i32) {
    %c0_i32 = arith.constant 0 : i32
    %c0_i32_0 = arith.constant 0 : i32
    %c0_i32_1 = arith.constant 0 : i32
    return %c0_i32, %c0_i32_0 : i32, i32
  }
  func.func @transform_14(%arg0: i32) -> (i32, i32) {
    %c0_i32 = arith.constant 0 : i32
    %c0_i32_0 = arith.constant 0 : i32
    %c0_i32_1 = arith.constant 0 : i32
    return %c0_i32, %c0_i32_0 : i32, i32
  }
  func.func @transform_15(%arg0: i32) -> (i32, i32) {
    %c0_i32 = arith.constant 0 : i32
    %c0_i32_0 = arith.constant 0 : i32
    %c0_i32_1 = arith.constant 0 : i32
    return %c0_i32, %c0_i32_0 : i32, i32
  }
  func.func @transform_16(%arg0: i32) -> (i32, i32) {
    %c0_i32 = arith.constant 0 : i32
    %c0_i32_0 = arith.constant 0 : i32
    %c0_i32_1 = arith.constant 0 : i32
    return %c0_i32, %c0_i32_0 : i32, i32
  }
  func.func @transform_17(%arg0: i32) -> (i32, i32) {
    %c0_i32 = arith.constant 0 : i32
    %c0_i32_0 = arith.constant 0 : i32
    %c0_i32_1 = arith.constant 0 : i32
    return %c0_i32, %c0_i32_0 : i32, i32
  }
  func.func @transform_18(%arg0: i32) -> (i32, i32) {
    %c0_i32 = arith.constant 0 : i32
    %c0_i32_0 = arith.constant 0 : i32
    %c0_i32_1 = arith.constant 0 : i32
    return %c0_i32, %c0_i32_0 : i32, i32
  }
  func.func @transform_19(%arg0: i32) -> (i32, i32) {
    %c0_i32 = arith.constant 0 : i32
    %c0_i32_0 = arith.constant 0 : i32
    %c0_i32_1 = arith.constant 0 : i32
    return %c0_i32, %c0_i32_0 : i32, i32
  }
}

</mosaic_0001>

<bundles_post_ra>
// kernel: tpu_custom_call.1
= control target key start
LH: loop header
LB: loop body
LE: loop exit
PB: predicated region body
PF: predicated region fallthrough
CT: control target
= control target key end

     0   :  { %s3065_s0 = inlined_call_operand.vmem [shape: f32[32,8], index: 0, kind: input, shape index: {}]   ;;  %s3066_s1 = inlined_call_operand.vmem [shape: f32[64,4], index: 1, kind: input, shape index: {}]   ;;  %s3067_s2 = inlined_call_operand.vmem [shape: f32[64,32], index: 2, kind: input, shape index: {}]   ;;  %s3068_s3 = inlined_call_operand.vmem [shape: f32[64,32], index: 3, kind: input, shape index: {}]   ;;  %s3069_s4 = inlined_call_operand.vmem [shape: f32[32,64], index: 4, kind: input, shape index: {}]   ;;  %s3070_s5 = inlined_call_operand.vmem [shape: f32[8,32], index: 5, kind: input, shape index: {}]   ;;  %s3071_s6 = inlined_call_operand.vmem [shape: f32[1,32], index: 6, kind: input, shape index: {}]   ;;  %s3072_s7 = inlined_call_operand.vmem [shape: f32[8,32], index: 7, kind: input, shape index: {}]   ;;  %s3073_s8 = inlined_call_operand.vmem [shape: f32[4,32], index: 8, kind: input, shape index: {}]   ;;  %s3074_s9 = inlined_call_operand.vmem [shape: f32[1,32], index: 9, kind: input, shape index: {}]   ;;  %s3075_s10 = inlined_call_operand.vmem [shape: f32[32,1], index: 10, kind: input, shape index: {}]   ;;  %s3076_s11 = inlined_call_operand.vmem [shape: f32[32,1], index: 11, kind: input, shape index: {}]   ;;  %s3077_s12 = inlined_call_operand.<no memory space> [shape: f32[1,1], index: 12, kind: input, shape index: {}]   ;;  %s3078_s13 = inlined_call_operand.vmem [shape: f32[32,32], index: 13, kind: input, shape index: {}]   ;;  %s3079_s14 = inlined_call_operand.vmem [shape: f32[1,32], index: 14, kind: input, shape index: {}]   ;;  %s3080_s15 = inlined_call_operand.vmem [shape: f32[32,96], index: 15, kind: input, shape index: {}]   ;;  %s3081_s16 = inlined_call_operand.vmem [shape: f32[32,96], index: 16, kind: input, shape index: {}]   ;;  %s3082_s17 = inlined_call_operand.vmem [shape: f32[1,96], index: 17, kind: input, shape index: {}]   ;;  %s3083_s18 = inlined_call_operand.vmem [shape: f32[1,96], index: 18, kind: input, shape index: {}]   ;;  %s3084_s19 = inlined_call_operand.hbm [shape: f32[32,32], index: 19, kind: output, shape index: {}]  }
   0x1   :  { %3089 = sst [smem:[#allocation6_spill]] %s3065_s0  ;;  %v24_v0 = vstv %s3077_s12 }
   0x2   :  { %3090 = sst [smem:[#allocation7_spill]] %s3066_s1  ;;  %25 = vst [vmem:[#allocation2] sm:$0x1] %v24_v0 }
   0x3   :  { %3091 = sst [smem:[#allocation8_spill]] %s3067_s2 }
   0x4   :  { %3092 = sst [smem:[#allocation9_spill]] %s3068_s3 }
   0x5   :  { %v93_v1 = vld [vmem:[%s3070_s5] sm:$0xff]  ;;  %s3093_s2 = sld [smem:[#allocation6_spill]]  ;;  %vm101_vm0 = vcmask 64512   ;;  %vm211_vm1 = vcmask 261120  }
   0x6   :  { %2185 = vmatprep.subr.mxu0 %v93_v1  ;;  %s3094_s28 = sld [smem:[#allocation8_spill]] }
   0x7   :  { %2186 = vmatpush3.msra.mxu0 %v93_v1 }
   0xb   :  { %v68_v2 = vld [vmem:[%s3093_s2 + $0x18] sm:$0xff]  ;;  %v65_v3 = vld [vmem:[%s3093_s2] sm:$0xff]  ;;  %v66_v4 = vld [vmem:[%s3093_s2 + $0x8] sm:$0xff] }
   0xc   :  { %2193 = vmatprep.subr.mxu1 %v68_v2  ;;  %v67_v5 = vld [vmem:[%s3093_s2 + $0x10] sm:$0xff]  ;;  %2187 = vmatprep.mubr.msk.f32.mxu0 %vm101_vm0, %v65_v3  ;;  %v77_v6 = vld [vmem:[%s3094_s28] sm:$0xff] }
   0xd   :  { %2194 = vmatpush3.msra.mxu1 %v68_v2  ;;  %2188 = vmatmul.mubr.msk.f32.vlgmr.msra.gmra.mxu0 %vm101_vm0, %v66_v4 }
   0xe   :  { %2195 = vmatprep.subr.mxu1 %v67_v5  ;;  %2190 = vmatprep.mubr.msk.f32.mxu0 %vm101_vm0, %v67_v5 }
   0xf   :  { %26 = vsyncpa [#allocation4], 0  ;;  %2196 = vmatpush3.msra.mxu1 %v67_v5  ;;  %2201 = vmatprep.mubr.msk.f32.mxu1 %vm211_vm1, %v77_v6  ;;  %v78_v7 = vld [vmem:[%s3094_s28 + $0x8] sm:$0xff]  ;;  %v79_v8 = vld [vmem:[%s3094_s28 + $0x10] sm:$0xff]  ;;  %vm368_vm2 = vcmask 1043456   ;;  %s3095_s30 = sld [smem:[#allocation7_spill]] }
  0x10   :  { %2197 = vmatprep.subr.mxu1 %v66_v4  ;;  %v80_v9 = vld [vmem:[%s3094_s28 + $0x18] sm:$0xff]  ;;  %v81_v10 = vld [vmem:[%s3094_s28 + $0x20] sm:$0xff]  ;;  %v82_v11 = vld [vmem:[%s3094_s28 + $0x28] sm:$0xff]  ;;  %vm343_vm3 = vcmask 31744   ;;  %s3096_s20 = sld [smem:[#allocation9_spill]]  ;;  %s2475_s21 = smov 64  }
  0x11   :  { %2198 = vmatpush3.msra.mxu1 %v66_v4  ;;  %2191 = vmatmul.mubr.msk.f32.gmra.mxu0 %vm101_vm0, %v68_v2  ;;  %v83_v12 = vld [vmem:[%s3094_s28 + $0x30] sm:$0xff]  ;;  %v84_v13 = vld [vmem:[%s3094_s28 + $0x38] sm:$0xff]  ;;  %v342_v14 = vld [vmem:[%s3073_s8] sm:$0xf] }
  0x12   :  { %2199 = vmatprep.subr.mxu1 %v65_v3  ;;  %2213 = vmatprep.subr.msk.mxu0 %vm368_vm2, %v342_v14  ;;  %v341_v19 = vld [vmem:[%s3072_s7] sm:$0xff]  ;;  %v781_v57 = vld [vmem:[%s3076_s11 + $0x18] sm:$0xff]  ;;  %v780_v59 = vld [vmem:[%s3076_s11 + $0x10] sm:$0xff] }
  0x13   :  { %2200 = vmatpush3.msra.mxu1 %v65_v3  ;;  %2214 = vmatpush3.msk.msra.mxu0 %vm368_vm2, %v342_v14  ;;  %v1987_v26 = vld [vmem:[%s3071_s6] ss:$0 sm:$0xff]  ;;  %v777_v58 = vld [vmem:[%s3075_s10 + $0x18] sm:$0xff]  ;;  %v776_v60 = vld [vmem:[%s3075_s10 + $0x10] sm:$0xff]  ;;  %s2478_s6 = smov [#allocation3]  }
  0x14   :  { %2202 = vmatmul.mubr.msk.f32.vlgmr.msra.gmra.mxu1 %vm211_vm1, %v78_v7  ;;  %2227 = vmatprep.subr.mxu1 %v341_v19  ;;  %v779_v61 = vld [vmem:[%s3076_s11 + $0x8] sm:$0xff]  ;;  %v778_v63 = vld [vmem:[%s3076_s11] sm:$0xff]  ;;  %v1332_v1 = vld [vmem:[%s3078_s13 + $0x18] sm:$0xff] }
  0x15   :  { %2204 = vmatprep.mubr.msk.f32.mxu1 %vm211_vm1, %v79_v8  ;;  %v69_v15 = vld [vmem:[%s3095_s30] sm:$0xff]  ;;  %v70_v16 = vld [vmem:[%s3095_s30 + $0x8] sm:$0xff]  ;;  %v71_v17 = vld [vmem:[%s3095_s30 + $0x10] sm:$0xff]  ;;  %2228 = vmatpush3.msra.mxu1 %v341_v19 }
  0x16   :  { %2215 = vmatprep.mubr.msk.f32.mxu0 %vm343_vm3, %v69_v15  ;;  %v72_v18 = vld [vmem:[%s3095_s30 + $0x18] sm:$0xff]  ;;  %v73_v20 = vld [vmem:[%s3095_s30 + $0x20] sm:$0xff]  ;;  %v74_v21 = vld [vmem:[%s3095_s30 + $0x28] sm:$0xff]  ;;  %2261 = vmatprep.subr.mxu1 %v781_v57 }
  0x17   :  { %2216 = vmatmul.mubr.msk.f32.vlgmr.msra.gmra.mxu0 %vm343_vm3, %v70_v16  ;;  %v75_v22 = vld [vmem:[%s3095_s30 + $0x30] sm:$0xff]  ;;  %v76_v23 = vld [vmem:[%s3095_s30 + $0x38] sm:$0xff]  ;;  %v2676_v24 = vld [vmem:[%s3096_s20] sm:$0xff] }
  0x18   :  { %2205 = vmatmul.mubr.msk.f32.gmra.mxu1 %vm211_vm1, %v80_v9  ;;  %2218 = vmatprep.mubr.msk.f32.mxu0 %vm343_vm3, %v71_v17  ;;  %v2704_v47 = vld [vmem:[%s3096_s20 + $0x8] sm:$0xff]  ;;  %v2710_v48 = vld [vmem:[%s3096_s20 + $0x10] sm:$0xff]  ;;  %v2722_v51 = vld [vmem:[%s3096_s20 + $0x18] sm:$0xff] }
  0x19   :  { %2207 = vmatprep.mubr.msk.f32.mxu1 %vm211_vm1, %v81_v10  ;;  %v2727_v52 = vld [vmem:[%s3096_s20 + $0x20] sm:$0xff]  ;;  %v2738_v54 = vld [vmem:[%s3096_s20 + $0x28] sm:$0xff]  ;;  %v2743_v55 = vld [vmem:[%s3096_s20 + $0x30] sm:$0xff] }
  0x1a   :  { %v2752_v56 = vld [vmem:[%s3096_s20 + $0x38] sm:$0xff]  ;;  %v775_v62 = vld [vmem:[%s3075_s10 + $0x8] sm:$0xff]  ;;  %v774_v0 = vld [vmem:[%s3075_s10] sm:$0xff]  ;;  %s1976_s20 = sshll.u32 %s2478_s6, 4  ;;  %s1977_s20 = int_to_ptr.vmem [resolvable:$true] %s1976_s20 }
  0x1b   :  { %2219 = vmatmul.mubr.msk.f32.gmra.mxu0 %vm343_vm3, %v72_v18  ;;  %v2017_v9 = vld [vmem:[%s3074_s9] ss:$0 sm:$0xff]  ;;  %s2452_s30 = scalar_lea.vmem %s1977_s20, 512  ;;  %p2457_p1 = scmp.lt.s32.totalorder %s1977_s20, %s1977_s20 }
  0x1c   :  { %2208 = vmatmul.mubr.msk.f32.gmra.mxu1 %vm211_vm1, %v82_v11  ;;  %2221 = vmatprep.mubr.msk.f32.mxu0 %vm343_vm3, %v73_v20  ;;  %p2453_p0 = scmp.ne.s32.totalorder %s1977_s20, %s2452_s30  ;;  %p2458_p2 = scmp.lt.s32.totalorder %s2452_s30, %s2452_s30 }
  0x1d   :  { %2210 = vmatprep.mubr.msk.f32.mxu1 %vm211_vm1, %v83_v12 }
  0x1e   :  { %p2459_p3 = por %p2458_p2, %p2457_p1 }
  0x1f   :  { %2222 = vmatmul.mubr.msk.f32.gmra.mxu0 %vm343_vm3, %v74_v21 }
  0x20   :  { %2211 = vmatmul.mubr.msk.f32.gmra.mxu1 %vm211_vm1, %v84_v13  ;;  %2224 = vmatprep.mubr.msk.f32.mxu0 %vm343_vm3, %v75_v22  ;;  %p2460_p4 = pnand %p2459_p3, %p2453_p0 }
  0x23   :  { %2225 = vmatmul.mubr.msk.f32.gmra.mxu0 %vm343_vm3, %v76_v23 }
  0x24   :  { %2249 = vmatprep.mubr.msk.f32.mxu0 %vm211_vm1, %v2676_v24 }
  0xcd   :  { %v2189_v25 = vpop.f32.mrf.mxu0 }
  0xce   :  { %v186_v29 = vadd.f32 %v2189_v25, %v1987_v26 }
  0xcf   :  { %v180_v27 = vpop.f32.mrf.mxu0 }
  0xd0   :  { %v181_v32 = vadd.f32 %v1987_v26, %v180_v27  ;;  %v204_v36 = vmul.f32 0.01, %v186_v29  ;;  %vm200_vm6 = vcmp.ge.f32.partialorder %v186_v29, 0.0 }
  0xd1   :  { %v2192_v28 = vpop.f32.mrf.mxu0 }
  0xd2   :  { %v196_v30 = vadd.f32 %v2192_v28, %v1987_v26  ;;  %v203_v40 = vmul.f32 0.01, %v181_v32  ;;  %vm199_vm7 = vcmp.ge.f32.partialorder %v181_v32, 0.0  ;;  %v2693_v44 = vsel %vm200_vm6, %v186_v29, %v204_v36 }
  0xd3   :  { %v190_v31 = vpop.f32.mrf.mxu0 }
  0xd4   :  { %vm202_vm4 = vcmp.ge.f32.partialorder %v196_v30, 0.0  ;;  %v206_v33 = vmul.f32 0.01, %v196_v30  ;;  %v191_v34 = vadd.f32 %v1987_v26, %v190_v31  ;;  %v2203_v35 = vpop.f32.mrf.mxu1  ;;  %v2699_v46 = vsel %vm199_vm7, %v181_v32, %v203_v40 }
  0xd6   :  { %vm201_vm5 = vcmp.ge.f32.partialorder %v191_v34, 0.0  ;;  %v205_v37 = vmul.f32 0.01, %v191_v34  ;;  %v302_v38 = vpop.f32.mrf.mxu1  ;;  %v2683_v39 = vsel %vm202_vm4, %v196_v30, %v206_v33 }
  0xd7   :  { %2229 = vmatprep.mubr.msk.f32.mxu1 %vm101_vm0, %v302_v38  ;;  %2241 = vmatprep.subr.mxu0 %v2683_v39  ;;  %v2217_v2 = vpop.f32.mrf.mxu0 }
  0xd8   :  { %v2206_v41 = vpop.f32.mrf.mxu1  ;;  %2230 = vmatmul.mubr.msk.f32.vlgmr.msra.gmra.mxu1 %vm101_vm0, %v2203_v35  ;;  %2242 = vmatpush3.msra.mxu0 %v2683_v39  ;;  %v2689_v42 = vsel %vm201_vm5, %v191_v34, %v205_v37  ;;  %v1331_v34 = vld [vmem:[%s3078_s13 + $0x10] sm:$0xff] }
  0xd9   :  { %2243 = vmatprep.subr.mxu0 %v2689_v42  ;;  %2262 = vmatpush3.msra.mxu1 %v781_v57  ;;  %v438_v3 = vpop.f32.mrf.mxu0 }
  0xda   :  { %v312_v43 = vpop.f32.mrf.mxu1  ;;  %2244 = vmatpush3.msra.mxu0 %v2689_v42  ;;  %2263 = vmatprep.subr.mxu1 %v780_v59 }
  0xdb   :  { %2232 = vmatprep.mubr.msk.f32.mxu1 %vm101_vm0, %v312_v43  ;;  %2245 = vmatprep.subr.mxu0 %v2693_v44  ;;  %v2220_v4 = vpop.f32.mrf.mxu0 }
  0xdc   :  { %v2209_v45 = vpop.f32.mrf.mxu1  ;;  %2233 = vmatmul.mubr.msk.f32.gmra.mxu1 %vm101_vm0, %v2206_v41  ;;  %2246 = vmatpush3.msra.mxu0 %v2693_v44 }
  0xdd   :  { %2247 = vmatprep.subr.mxu0 %v2699_v46  ;;  %2264 = vmatpush3.msra.mxu1 %v780_v59  ;;  %v448_v5 = vpop.f32.mrf.mxu0 }
  0xde   :  { %v322_v49 = vpop.f32.mrf.mxu1  ;;  %2248 = vmatpush3.msra.mxu0 %v2699_v46  ;;  %2265 = vmatprep.subr.mxu1 %v779_v61 }
  0xdf   :  { %2235 = vmatprep.mubr.msk.f32.mxu1 %vm101_vm0, %v322_v49  ;;  %2250 = vmatmul.mubr.msk.f32.vlgmr.msra.gmra.mxu0 %vm211_vm1, %v2704_v47  ;;  %v2223_v6 = vpop.f32.mrf.mxu0 }
  0xe0   :  { %v2212_v50 = vpop.f32.mrf.mxu1  ;;  %2236 = vmatmul.mubr.msk.f32.gmra.mxu1 %vm101_vm0, %v2209_v45  ;;  %2252 = vmatprep.mubr.msk.f32.mxu0 %vm211_vm1, %v2710_v48 }
  0xe1   :  { %2281 = vmatprep.subr.mxu0 %v777_v58  ;;  %2266 = vmatpush3.msra.mxu1 %v779_v61  ;;  %v458_v7 = vpop.f32.mrf.mxu0 }
  0xe2   :  { %v332_v53 = vpop.f32.mrf.mxu1  ;;  %2282 = vmatpush3.msra.mxu0 %v777_v58  ;;  %2267 = vmatprep.subr.mxu1 %v778_v63  ;;  %v1330_v58 = vld [vmem:[%s3078_s13 + $0x8] sm:$0xff] }
  0xe3   :  { %2238 = vmatprep.mubr.msk.f32.mxu1 %vm101_vm0, %v332_v53  ;;  %2253 = vmatmul.mubr.msk.f32.gmra.mxu0 %vm211_vm1, %v2722_v51  ;;  %v2226_v11 = vpop.f32.mrf.mxu0 }
  0xe4   :  { %2239 = vmatmul.mubr.msk.f32.gmra.mxu1 %vm101_vm0, %v2212_v50  ;;  %2255 = vmatprep.mubr.msk.f32.mxu0 %vm211_vm1, %v2727_v52 }
  0xe5   :  { %2283 = vmatprep.subr.mxu0 %v776_v60  ;;  %2268 = vmatpush3.msra.mxu1 %v778_v63  ;;  %v468_v18 = vpop.f32.mrf.mxu0 }
  0xe6   :  { %2284 = vmatpush3.msra.mxu0 %v776_v60  ;;  %2301 = vmatprep.subr.mxu1 %v1332_v1 }
  0xe7   :  { %2256 = vmatmul.mubr.msk.f32.gmra.mxu0 %vm211_vm1, %v2738_v54  ;;  %2285 = vmatprep.subr.mxu0 %v775_v62 }
  0xe8   :  { %2258 = vmatprep.mubr.msk.f32.mxu0 %vm211_vm1, %v2743_v55  ;;  %2286 = vmatpush3.msra.mxu0 %v775_v62 }
  0xe9   :  { %2287 = vmatprep.subr.mxu0 %v774_v0 }
  0xea   :  { %2288 = vmatpush3.msra.mxu0 %v774_v0 }
  0xeb   :  { %2259 = vmatmul.mubr.msk.f32.gmra.mxu0 %vm211_vm1, %v2752_v56 }
 0x198   :  { %v2231_v8 = vpop.f32.mrf.mxu1 }
 0x199   :  { %v573_v10 = vadd.f32 %v2231_v8, %v2217_v2 }
 0x19a   :  { %v567_v12 = vpop.f32.mrf.mxu1 }
 0x19b   :  { %v614_v13 = vadd.f32 %v2017_v9, %v573_v10  ;;  %v568_v14 = vadd.f32 %v567_v12, %v438_v3  ;;  %v2817_v10 = vld [vmem:[%s3081_s16 + $0x18] sm:$0xff]  ;;  %v2835_v12 = vld [vmem:[%s3081_s16 + $0x8] sm:$0xff] }
 0x19c   :  { %v2234_v15 = vpop.f32.mrf.mxu1 }
 0x19d   :  { %v613_v16 = vadd.f32 %v2017_v9, %v568_v14  ;;  %v583_v17 = vadd.f32 %v2234_v15, %v2220_v4  ;;  %v630_v19 = vmul.f32 0.01, %v614_v13  ;;  %vm622_vm8 = vcmp.ge.f32.partialorder %v614_v13, 0.0  ;;  %v1329_v4 = vld [vmem:[%s3078_s13] sm:$0xff] }
 0x19e   :  { %v577_v20 = vpop.f32.mrf.mxu1  ;;  %v2474_v14 = vmov 0  }
 0x19f   :  { %v629_v21 = vmul.f32 0.01, %v613_v16  ;;  %v616_v22 = vadd.f32 %v2017_v9, %v583_v17  ;;  %v578_v23 = vadd.f32 %v577_v20, %v448_v5  ;;  %v2251_v25 = vpop.f32.mrf.mxu0  ;;  %vm621_vm9 = vcmp.ge.f32.partialorder %v613_v16, 0.0  ;;  %2386 = vset.pattern.permute.xlu0 %v2474_v14  ;;  %2387 = vset.pattern.permute.xlu1 %v2474_v14  ;;  %v2042_v17 = vld [vmem:[#allocation2] ss:$0 sm:$0xff] }
 0x1a0   :  { %v2237_v26 = vpop.f32.mrf.mxu1  ;;  %v2786_v31 = vsel %vm622_vm8, %v614_v13, %v630_v19  ;;  %v2842_v13 = vld [vmem:[%s3081_s16] sm:$0xff] }
 0x1a1   :  { %v615_v27 = vadd.f32 %v2017_v9, %v578_v23  ;;  %v593_v28 = vadd.f32 %v2237_v26, %v2223_v6  ;;  %v735_v29 = vpop.f32.mrf.mxu0  ;;  %v637_v30 = vsel %vm621_vm9, %v613_v16, %v629_v21  ;;  %v632_v32 = vmul.f32 0.01, %v616_v22 }
 0x1a2   :  { %v587_v33 = vpop.f32.mrf.mxu1  ;;  %2269 = vmatprep.mubr.msk.f32.mxu1 %vm211_vm1, %v637_v30  ;;  %2289 = vmatprep.mubr.msk.f32.mxu0 %vm211_vm1, %v735_v29  ;;  %vm624_vm10 = vcmp.ge.f32.partialorder %v616_v22, 0.0  ;;  %vm1080_vm9 = vcmp.gt.f32.partialorder %v2704_v47, 0.0 }
 0x1a3   :  { %v631_v35 = vmul.f32 0.01, %v615_v27  ;;  %v618_v36 = vadd.f32 %v2017_v9, %v593_v28  ;;  %v588_v37 = vadd.f32 %v587_v33, %v458_v7  ;;  %2270 = vmatmul.mubr.msk.f32.vlgmr.msra.gmra.mxu1 %vm211_vm1, %v2786_v31  ;;  %v2254_v38 = vpop.f32.mrf.mxu0  ;;  %2290 = vmatmul.mubr.msk.f32.vlgmr.msra.gmra.mxu0 %vm211_vm1, %v2251_v25  ;;  %vm623_vm11 = vcmp.ge.f32.partialorder %v615_v27, 0.0 }
 0x1a4   :  { %v2240_v40 = vpop.f32.mrf.mxu1  ;;  %2302 = vmatpush3.msra.mxu1 %v1332_v1  ;;  %v640_v57 = vsel %vm624_vm10, %v616_v22, %v632_v32  ;;  %vm1083_vm10 = vcmp.gt.f32.partialorder %v2727_v52, 0.0 }
 0x1a5   :  { %v617_v41 = vadd.f32 %v2017_v9, %v588_v37  ;;  %v603_v43 = vadd.f32 %v2240_v40, %v2226_v11  ;;  %v745_v45 = vpop.f32.mrf.mxu0  ;;  %v639_v49 = vsel %vm623_vm11, %v615_v27, %v631_v35  ;;  %2303 = vmatprep.subr.mxu1 %v1331_v34  ;;  %v634_v50 = vmul.f32 0.01, %v618_v36  ;;  %v2826_v11 = vld [vmem:[%s3081_s16 + $0x10] sm:$0xff] }
 0x1a6   :  { %v597_v53 = vpop.f32.mrf.mxu1  ;;  %2272 = vmatprep.mubr.msk.f32.mxu1 %vm211_vm1, %v639_v49  ;;  %2292 = vmatprep.mubr.msk.f32.mxu0 %vm211_vm1, %v745_v45  ;;  %vm626_vm12 = vcmp.ge.f32.partialorder %v618_v36, 0.0  ;;  %vm1084_vm11 = vcmp.gt.f32.partialorder %v2738_v54, 0.0 }
 0x1a7   :  { %v633_v59 = vmul.f32 0.01, %v617_v41  ;;  %v620_v60 = vadd.f32 %v2017_v9, %v603_v43  ;;  %v598_v61 = vadd.f32 %v597_v53, %v468_v18  ;;  %2273 = vmatmul.mubr.msk.f32.gmra.mxu1 %vm211_vm1, %v640_v57  ;;  %v2257_v62 = vpop.f32.mrf.mxu0  ;;  %2293 = vmatmul.mubr.msk.f32.gmra.mxu0 %vm211_vm1, %v2254_v38  ;;  %vm625_vm13 = vcmp.ge.f32.partialorder %v617_v41, 0.0 }
 0x1a8   :  { %2304 = vmatpush3.msra.mxu1 %v1331_v34  ;;  %v642_v3 = vsel %vm626_vm12, %v618_v36, %v634_v50  ;;  %vm1082_vm12 = vcmp.gt.f32.partialorder %v2722_v51, 0.0 }
 0x1a9   :  { %v619_v63 = vadd.f32 %v2017_v9, %v598_v61  ;;  %v755_v0 = vpop.f32.mrf.mxu0  ;;  %v641_v1 = vsel %vm625_vm13, %v617_v41, %v633_v59  ;;  %2305 = vmatprep.subr.mxu1 %v1330_v58  ;;  %v636_v2 = vmul.f32 0.01, %v620_v60  ;;  %vm628_vm15 = vcmp.ge.f32.partialorder %v620_v60, 0.0 }
 0x1aa   :  { %2275 = vmatprep.mubr.msk.f32.mxu1 %vm211_vm1, %v641_v1  ;;  %2295 = vmatprep.mubr.msk.f32.mxu0 %vm211_vm1, %v755_v0  ;;  %vm1079_vm13 = vcmp.gt.f32.partialorder %v2676_v24, 0.0 }
 0x1ab   :  { %v635_v5 = vmul.f32 0.01, %v619_v63  ;;  %2276 = vmatmul.mubr.msk.f32.gmra.mxu1 %vm211_vm1, %v642_v3  ;;  %v2260_v6 = vpop.f32.mrf.mxu0  ;;  %2296 = vmatmul.mubr.msk.f32.gmra.mxu0 %vm211_vm1, %v2257_v62  ;;  %vm627_vm14 = vcmp.ge.f32.partialorder %v619_v63, 0.0  ;;  %v644_v9 = vsel %vm628_vm15, %v620_v60, %v636_v2  ;;  %vm1085_vm15 = vcmp.gt.f32.partialorder %v2743_v55, 0.0 }
 0x1ac   :  { %2306 = vmatpush3.msra.mxu1 %v1330_v58 }
 0x1ad   :  { %v765_v7 = vpop.f32.mrf.mxu0  ;;  %v643_v8 = vsel %vm627_vm14, %v619_v63, %v635_v5  ;;  %2307 = vmatprep.subr.mxu1 %v1329_v4  ;;  %vm1081_vm14 = vcmp.gt.f32.partialorder %v2710_v48, 0.0 }
 0x1ae   :  { %2278 = vmatprep.mubr.msk.f32.mxu1 %vm211_vm1, %v643_v8  ;;  %2298 = vmatprep.mubr.msk.f32.mxu0 %vm211_vm1, %v765_v7 }
 0x1af   :  { %2279 = vmatmul.mubr.msk.f32.gmra.mxu1 %vm211_vm1, %v644_v9  ;;  %2299 = vmatmul.mubr.msk.f32.gmra.mxu0 %vm211_vm1, %v2260_v6 }
 0x1b0   :  { %2309 = vmatprep.mubr.msk.f32.mxu1 %vm211_vm1, %v637_v30  ;;  %2308 = vmatpush3.msra.mxu1 %v1329_v4 }
 0x1b1   :  { %2371 = vmatprep.subr.mxu1 %v2817_v10 }
 0x1b3   :  { %2310 = vmatmul.mubr.msk.f32.vlgmr.msra.gmra.mxu1 %vm211_vm1, %v2786_v31 }
 0x1b4   :  { %2312 = vmatprep.mubr.msk.f32.mxu1 %vm211_vm1, %v639_v49  ;;  %2375 = vmatpush3.msra.mxu1 %v2817_v10 }
 0x1b5   :  { %2372 = vmatprep.subr.mxu1 %v2826_v11 }
 0x1b6   :  { %2376 = vmatpush3.msra.mxu1 %v2826_v11 }
 0x1b7   :  { %2313 = vmatmul.mubr.msk.f32.gmra.mxu1 %vm211_vm1, %v640_v57  ;;  %2373 = vmatprep.subr.mxu1 %v2835_v12 }
 0x1b8   :  { %2315 = vmatprep.mubr.msk.f32.mxu1 %vm211_vm1, %v641_v1  ;;  %2377 = vmatpush3.msra.mxu1 %v2835_v12 }
 0x1b9   :  { %2374 = vmatprep.subr.mxu1 %v2842_v13 }
 0x1ba   :  { %2378 = vmatpush3.msra.mxu1 %v2842_v13 }
 0x1bb   :  { %2316 = vmatmul.mubr.msk.f32.gmra.mxu1 %vm211_vm1, %v642_v3 }
 0x1bc   :  { %2318 = vmatprep.mubr.msk.f32.mxu1 %vm211_vm1, %v643_v8 }
 0x1bf   :  { %2319 = vmatmul.mubr.msk.f32.gmra.mxu1 %vm211_vm1, %v644_v9 }
 0x1c0   :  { %2368 = vmatprep.mubr.msk.f32.mxu1 %vm211_vm1, %v2689_v42 }
 0x1c3   :  { %2369 = vmatmul.mubr.msk.f32.vlgmr.msra.gmra.mxu1 %vm211_vm1, %v2683_v39 }
 0x263   :  { %v2271_v15 = vpop.f32.mrf.mxu1  ;;  %v2291_v16 = vpop.f32.mrf.mxu0 }
 0x264   :  { %v1007_v18 = vadd.f32 %v2291_v16, %v2271_v15 }
 0x265   :  { %v872_v19 = vpop.f32.mrf.mxu1  ;;  %v1001_v20 = vpop.f32.mrf.mxu0 }
 0x266   :  { %v1048_v21 = vadd.f32 %v2042_v17, %v1007_v18  ;;  %v1002_v22 = vadd.f32 %v1001_v20, %v872_v19 }
 0x267   :  { %v2274_v23 = vpop.f32.mrf.mxu1  ;;  %v2294_v25 = vpop.f32.mrf.mxu0 }
 0x268   :  { %v1047_v26 = vadd.f32 %v2042_v17, %v1002_v22  ;;  %v1017_v27 = vadd.f32 %v2294_v25, %v2274_v23  ;;  %vm1056_vm0 = vcmp.ge.f32.partialorder %v1048_v21, 0.0  ;;  %v1064_v28 = vmul.f32 0.01, %v1048_v21 }
 0x269   :  { %v882_v29 = vpop.f32.mrf.mxu1  ;;  %v1011_v30 = vpop.f32.mrf.mxu0 }
 0x26a   :  { %v1050_v31 = vadd.f32 %v2042_v17, %v1017_v27  ;;  %v1012_v32 = vadd.f32 %v1011_v30, %v882_v29  ;;  %v2857_v33 = vsel %vm1056_vm0, %v1048_v21, %v1064_v28  ;;  %vm1055_vm2 = vcmp.ge.f32.partialorder %v1047_v26, 0.0 }
 0x26b   :  { %v2277_v34 = vpop.f32.mrf.mxu1  ;;  %1094 = vperm.xlu0 %2386, %v2857_v33   ;;  %v2297_v35 = vpop.f32.mrf.mxu0  ;;  %v1063_v36 = vmul.f32 0.01, %v1047_v26  ;;  %vm1086_vm0 = vcmp.gt.f32.partialorder %v2752_v56, 0.0 }
 0x26c   :  { %v1049_v37 = vadd.f32 %v2042_v17, %v1012_v32  ;;  %v1027_v38 = vadd.f32 %v2297_v35, %v2277_v34  ;;  %vm1058_vm3 = vcmp.ge.f32.partialorder %v1050_v31, 0.0  ;;  %v1066_v40 = vmul.f32 0.01, %v1050_v31 }
 0x26d   :  { %v892_v41 = vpop.f32.mrf.mxu1  ;;  %v1021_v43 = vpop.f32.mrf.mxu0  ;;  %v2860_v45 = vsel %vm1055_vm2, %v1047_v26, %v1063_v36  ;;  %vm1497_vm2 = vcmask 523264  }
 0x26e   :  { %v1052_v49 = vadd.f32 %v2042_v17, %v1027_v38  ;;  %v1022_v50 = vadd.f32 %v1021_v43, %v892_v41  ;;  %v2862_v53 = vsel %vm1058_vm3, %v1050_v31, %v1066_v40  ;;  %vm1057_vm4 = vcmp.ge.f32.partialorder %v1049_v37, 0.0 }
 0x26f   :  { %v2280_v57 = vpop.f32.mrf.mxu1  ;;  %1104 = vperm.xlu1 %2387, %v2862_v53   ;;  %v2300_v58 = vpop.f32.mrf.mxu0  ;;  %1089 = vperm.xlu0 %2386, %v2860_v45   ;;  %v1065_v59 = vmul.f32 0.01, %v1049_v37 }
 0x270   :  { %v1051_v60 = vadd.f32 %v2042_v17, %v1022_v50  ;;  %v1037_v61 = vadd.f32 %v2300_v58, %v2280_v57  ;;  %v1068_v1 = vmul.f32 0.01, %v1052_v49  ;;  %vm1060_vm6 = vcmp.ge.f32.partialorder %v1052_v49, 0.0 }
 0x271   :  { %v902_v62 = vpop.f32.mrf.mxu1  ;;  %v1031_v63 = vpop.f32.mrf.mxu0  ;;  %v2866_v0 = vsel %vm1057_vm4, %v1049_v37, %v1065_v59 }
 0x272   :  { %v1054_v2 = vadd.f32 %v2042_v17, %v1037_v61  ;;  %v1032_v3 = vadd.f32 %v1031_v63, %v902_v62  ;;  %vm1059_vm5 = vcmp.ge.f32.partialorder %v1051_v60, 0.0  ;;  %v1067_v4 = vmul.f32 0.01, %v1051_v60 }
 0x273   :  { %1099 = vperm.xlu1 %2387, %v2866_v0   ;;  %v2872_v7 = vsel %vm1060_vm6, %v1052_v49, %v1068_v1 }
 0x274   :  { %v1053_v5 = vadd.f32 %v2042_v17, %v1032_v3  ;;  %v2869_v6 = vsel %vm1059_vm5, %v1051_v60, %v1067_v4  ;;  %v1070_v9 = vmul.f32 0.01, %v1054_v2  ;;  %vm1062_vm8 = vcmp.ge.f32.partialorder %v1054_v2, 0.0 }
 0x275   :  { %1109 = vperm.xlu0 %2386, %v2869_v6  }
 0x276   :  { %vm1061_vm7 = vcmp.ge.f32.partialorder %v1053_v5, 0.0  ;;  %v1069_v8 = vmul.f32 0.01, %v1053_v5  ;;  %v2878_v15 = vsel %vm1062_vm8, %v1054_v2, %v1070_v9 }
 0x277   :  { %1114 = vperm.xlu1 %2387, %v2872_v7  }
 0x278   :  { %v2875_v14 = vsel %vm1061_vm7, %v1053_v5, %v1069_v8 }
 0x279   :  { %1119 = vperm.xlu0 %2386, %v2875_v14  }
 0x27b   :  { %1124 = vperm.xlu1 %2387, %v2878_v15  }
 0x2e6   :  { %v1095_v16 = vpop.permute.xlu0 %1094 }
 0x2e7   :  { %v1128_v22 = vsel %vm1080_vm9, %v1095_v16, -1e+30 }
 0x2e8   :  { %v1136_v32 = vsel %vm211_vm1, %v1128_v22, -inf }
 0x2ea   :  { %v1105_v17 = vpop.permute.xlu1 %1104  ;;  %v1090_v18 = vpop.permute.xlu0 %1089 }
 0x2eb   :  { %v1130_v26 = vsel %vm1082_vm12, %v1105_v17, -1e+30  ;;  %v1127_v29 = vsel %vm1079_vm13, %v1090_v18, -1e+30 }
 0x2ec   :  { %v1138_v40 = vsel %vm211_vm1, %v1130_v26, -inf  ;;  %v1135_v41 = vsel %vm211_vm1, %v1127_v29, -inf }
 0x2ee   :  { %v1100_v19 = vpop.permute.xlu1 %1099 }
 0x2ef   :  { %v1129_v30 = vsel %vm1081_vm14, %v1100_v19, -1e+30 }
 0x2f0   :  { %v1110_v20 = vpop.permute.xlu0 %1109  ;;  %v1137_v43 = vsel %vm211_vm1, %v1129_v30, -inf }
 0x2f1   :  { %v1131_v23 = vsel %vm1083_vm10, %v1110_v20, -1e+30 }
 0x2f2   :  { %v1115_v21 = vpop.permute.xlu1 %1114  ;;  %v1139_v34 = vsel %vm211_vm1, %v1131_v23, -inf }
 0x2f3   :  { %v1132_v25 = vsel %vm1084_vm11, %v1115_v21, -1e+30  ;;  %v1140_v50 = vmax.f32 %v1135_v41, %v1139_v34 }
 0x2f4   :  { %v1141_v27 = vsel %vm211_vm1, %v1132_v25, -inf  ;;  %v1120_v28 = vpop.permute.xlu0 %1119 }
 0x2f5   :  { %v1133_v31 = vsel %vm1085_vm15, %v1120_v28, -1e+30  ;;  %v1142_v37 = vmax.f32 %v1136_v32, %v1141_v27 }
 0x2f6   :  { %v1143_v35 = vsel %vm211_vm1, %v1133_v31, -inf  ;;  %v1125_v36 = vpop.permute.xlu1 %1124 }
 0x2f7   :  { %v1134_v38 = vsel %vm1086_vm0, %v1125_v36, -1e+30  ;;  %v1144_v57 = vmax.f32 %v1137_v43, %v1143_v35  ;;  %v1147_v59 = vmax.f32 %v1140_v50, %v1142_v37 }
 0x2f8   :  { %v1145_v49 = vsel %vm211_vm1, %v1134_v38, -inf }
 0x2f9   :  { %v1146_v58 = vmax.f32 %v1138_v40, %v1145_v49 }
 0x2fb   :  { %v1148_v60 = vmax.f32 %v1144_v57, %v1146_v58 }
 0x2fd   :  { %v1149_v61 = vmax.f32 %v1147_v59, %v1148_v60 }
 0x2ff   :  { %v1150_v62 = vrot.slane %v1149_v61, 4 }
 0x301   :  { %v1151_v63 = vmax.f32 %v1149_v61, %v1150_v62 }
 0x303   :  { %v1152_v1 = vrot.slane %v1151_v63, 2 }
 0x305   :  { %v1153_v2 = vmax.f32 %v1151_v63, %v1152_v1 }
 0x307   :  { %v1154_v3 = vrot.slane %v1153_v2, 1 }
 0x309   :  { %v1155_v4 = vmax.f32 %v1153_v2, %v1154_v3 }
 0x30b   :  { %v1157_v5 = vmul.f32 %v1155_v4, %v2704_v47  ;;  %v1156_v8 = vmul.f32 %v1155_v4, %v2676_v24  ;;  %v1160_v17 = vmul.f32 %v1155_v4, %v2727_v52  ;;  %v1158_v18 = vmul.f32 %v1155_v4, %v2710_v48 }
 0x30c   :  { %v1162_v21 = vmul.f32 %v1155_v4, %v2743_v55  ;;  %v1159_v22 = vmul.f32 %v1155_v4, %v2722_v51  ;;  %v1161_v26 = vmul.f32 %v1155_v4, %v2738_v54  ;;  %v1163_v28 = vmul.f32 %v1155_v4, %v2752_v56 }
 0x30d   :  { %v1167_v9 = vsel %vm211_vm1, %v1157_v5, 0.0  ;;  %v1164_v16 = vsel %vm211_vm1, %v1156_v8, 0.0  ;;  %v1176_v19 = vsel %vm211_vm1, %v1160_v17, 0.0  ;;  %v1170_v20 = vsel %vm211_vm1, %v1158_v18, 0.0 }
 0x30e   :  { %1168 = vadd.xlane.f32.xlu1 %v1167_v9  ;;  %1165 = vadd.xlane.f32.xlu0 %v1164_v16  ;;  %v1182_v23 = vsel %vm211_vm1, %v1162_v21, 0.0  ;;  %v1173_v25 = vsel %vm211_vm1, %v1159_v22, 0.0  ;;  %v1179_v27 = vsel %vm211_vm1, %v1161_v26, 0.0  ;;  %v1185_v29 = vsel %vm211_vm1, %v1163_v28, 0.0 }
 0x312   :  { %1177 = vadd.xlane.f32.xlu1 %v1176_v19  ;;  %1171 = vadd.xlane.f32.xlu0 %v1170_v20 }
 0x316   :  { %1183 = vadd.xlane.f32.xlu1 %v1182_v23  ;;  %1174 = vadd.xlane.f32.xlu0 %v1173_v25 }
 0x31a   :  { %1180 = vadd.xlane.f32.xlu0 %v1179_v27 }
 0x31e   :  { %1186 = vadd.xlane.f32.xlu0 %v1185_v29 }
 0x397   :  { %v1169_v30 = vpop.xlane.xlu1 %1168  ;;  %v1166_v31 = vpop.xlane.xlu0 %1165 }
 0x398   :  { %v1189_v32 = vsub.f32 %v2857_v33, %v1169_v30  ;;  %v1188_v34 = vsub.f32 %v2860_v45, %v1166_v31 }
 0x39a   :  { %v1198_v35 = vmul.f32 1.442695, %v1189_v32  ;;  %v1196_v36 = vmul.f32 1.442695, %v1188_v34 }
 0x39b   :  { %v1178_v37 = vpop.xlane.xlu1 %1177  ;;  %v1172_v38 = vpop.xlane.xlu0 %1171 }
 0x39c   :  { %2388 = vpow2.f32 %v1198_v35  ;;  %v1192_v40 = vsub.f32 %v2869_v6, %v1178_v37  ;;  %v1190_v41 = vsub.f32 %v2866_v0, %v1172_v38 }
 0x39d   :  { %2390 = vpow2.f32 %v1196_v36 }
 0x39e   :  { %v1204_v43 = vmul.f32 1.442695, %v1192_v40  ;;  %v1200_v49 = vmul.f32 1.442695, %v1190_v41 }
 0x39f   :  { %v1184_v50 = vpop.xlane.xlu1 %1183  ;;  %v1175_v57 = vpop.xlane.xlu0 %1174 }
 0x3a0   :  { %2392 = vpow2.f32 %v1204_v43  ;;  %v1194_v58 = vsub.f32 %v2875_v14, %v1184_v50  ;;  %v1191_v33 = vsub.f32 %v2862_v53, %v1175_v57 }
 0x3a1   :  { %2394 = vpow2.f32 %v1200_v49 }
 0x3a2   :  { %v1208_v45 = vmul.f32 1.442695, %v1194_v58  ;;  %v1202_v59 = vmul.f32 1.442695, %v1191_v33 }
 0x3a3   :  { %v1181_v60 = vpop.xlane.xlu0 %1180 }
 0x3a4   :  { %2396 = vpow2.f32 %v1208_v45  ;;  %v1193_v61 = vsub.f32 %v2872_v7, %v1181_v60 }
 0x3a5   :  { %2398 = vpow2.f32 %v1202_v59 }
 0x3a6   :  { %v1206_v6 = vmul.f32 1.442695, %v1193_v61 }
 0x3a7   :  { %v1187_v0 = vpop.xlane.xlu0 %1186 }
 0x3a8   :  { %2400 = vpow2.f32 %v1206_v6  ;;  %v1195_v62 = vsub.f32 %v2878_v15, %v1187_v0 }
 0x3a9   :  { %v2921_v63 = vpop.eup %2388 }
 0x3aa   :  { %v2923_v1 = vpop.eup %2390  ;;  %v1210_v14 = vmul.f32 1.442695, %v1195_v62  ;;  %1219 = vperm.xlu0 %2386, %v2921_v63  }
 0x3ab   :  { %1214 = vperm.xlu1 %2387, %v2923_v1  }
 0x3ac   :  { %2402 = vpow2.f32 %v1210_v14 }
 0x3ad   :  { %v2927_v53 = vpop.eup %2392 }
 0x3ae   :  { %v2929_v2 = vpop.eup %2394  ;;  %1234 = vperm.xlu0 %2386, %v2927_v53  }
 0x3af   :  { %1224 = vperm.xlu1 %2387, %v2929_v2  }
 0x3b1   :  { %v2933_v7 = vpop.eup %2396 }
 0x3b2   :  { %v2935_v15 = vpop.eup %2398  ;;  %1244 = vperm.xlu0 %2386, %v2933_v7  }
 0x3b3   :  { %1229 = vperm.xlu1 %2387, %v2935_v15  }
 0x3b5   :  { %v2939_v3 = vpop.eup %2400 }
 0x3b7   :  { %1239 = vperm.xlu1 %2387, %v2939_v3  }
 0x3b9   :  { %v2942_v4 = vpop.eup %2402 }
 0x3bb   :  { %1249 = vperm.xlu1 %2387, %v2942_v4  }
 0x425   :  { %v1220_v5 = vpop.permute.xlu0 %1219 }
 0x426   :  { %v1215_v8 = vpop.permute.xlu1 %1214  ;;  %v1253_v16 = vmul.f32 %v1220_v5, %v2704_v47 }
 0x427   :  { %v1252_v9 = vmul.f32 %v1215_v8, %v2676_v24 }
 0x428   :  { %v1261_v20 = vsel %vm211_vm1, %v1253_v16, 0.0 }
 0x429   :  { %v1235_v18 = vpop.permute.xlu0 %1234  ;;  %v1260_v19 = vsel %vm211_vm1, %v1252_v9, 0.0 }
 0x42a   :  { %v1225_v17 = vpop.permute.xlu1 %1224  ;;  %v1262_v23 = vadd.f32 %v1261_v20, %v1260_v19  ;;  %v1256_v26 = vmul.f32 %v1235_v18, %v2727_v52 }
 0x42b   :  { %v1254_v21 = vmul.f32 %v1225_v17, %v2710_v48 }
 0x42c   :  { %v1267_v34 = vsel %vm211_vm1, %v1256_v26, 0.0 }
 0x42d   :  { %v1263_v22 = vsel %vm211_vm1, %v1254_v21, 0.0  ;;  %v1245_v29 = vpop.permute.xlu0 %1244 }
 0x42e   :  { %v1230_v25 = vpop.permute.xlu1 %1229  ;;  %v1264_v28 = vadd.f32 %v1263_v22, %v1262_v23  ;;  %v1258_v35 = vmul.f32 %v1245_v29, %v2743_v55 }
 0x42f   :  { %v1255_v27 = vmul.f32 %v1230_v25, %v2722_v51 }
 0x430   :  { %v1271_v43 = vsel %vm211_vm1, %v1258_v35, 0.0 }
 0x431   :  { %v1265_v30 = vsel %vm211_vm1, %v1255_v27, 0.0 }
 0x432   :  { %v1266_v31 = vadd.f32 %v1265_v30, %v1264_v28  ;;  %v1240_v32 = vpop.permute.xlu1 %1239 }
 0x433   :  { %v1257_v36 = vmul.f32 %v1240_v32, %v2738_v54 }
 0x434   :  { %v1268_v37 = vadd.f32 %v1267_v34, %v1266_v31 }
 0x435   :  { %v1269_v38 = vsel %vm211_vm1, %v1257_v36, 0.0 }
 0x436   :  { %v1270_v40 = vadd.f32 %v1269_v38, %v1268_v37  ;;  %v1250_v41 = vpop.permute.xlu1 %1249 }
 0x437   :  { %v1259_v49 = vmul.f32 %v1250_v41, %v2752_v56 }
 0x438   :  { %v1272_v50 = vadd.f32 %v1271_v43, %v1270_v40 }
 0x439   :  { %v1273_v57 = vsel %vm211_vm1, %v1259_v49, 0.0 }
 0x43a   :  { %v1274_v58 = vadd.f32 %v1273_v57, %v1272_v50 }
 0x43c   :  { %v1275_v33 = vrot.slane %v1274_v58, 4 }
 0x43e   :  { %v1276_v45 = vadd.f32 %v1275_v33, %v1274_v58 }
 0x440   :  { %v1277_v59 = vrot.slane %v1276_v45, 2 }
 0x442   :  { %v1278_v60 = vadd.f32 %v1277_v59, %v1276_v45 }
 0x444   :  { %v1279_v61 = vrot.slane %v1278_v60, 1 }
 0x446   :  { %v1280_v6 = vadd.f32 %v1279_v61, %v1278_v60 }
 0x448   :  { %v1288_v0 = vmul.f32 %v1280_v6, %v2752_v56  ;;  %v1287_v62 = vmul.f32 %v1280_v6, %v2743_v55  ;;  %v1286_v8 = vmul.f32 %v1280_v6, %v2738_v54  ;;  %v1284_v9 = vmul.f32 %v1280_v6, %v2722_v51 }
 0x449   :  { %v1285_v18 = vmul.f32 %v1280_v6, %v2727_v52  ;;  %v1282_v56 = vmul.f32 %v1280_v6, %v2704_v47  ;;  %v1283_v54 = vmul.f32 %v1280_v6, %v2710_v48  ;;  %v1281_v20 = vmul.f32 %v1280_v6, %v2676_v24 }
 0x44a   :  { %v1310_v14 = vsel %vm211_vm1, %v1288_v0, 0.0  ;;  %v1307_v5 = vsel %vm211_vm1, %v1287_v62, 0.0  ;;  %v1304_v16 = vsel %vm211_vm1, %v1286_v8, 0.0  ;;  %v1298_v17 = vsel %vm211_vm1, %v1284_v9, 0.0 }
 0x44b   :  { %1311 = vadd.xlane.f32.xlu0 %v1310_v14  ;;  %1308 = vadd.xlane.f32.xlu1 %v1307_v5  ;;  %v1301_v55 = vsel %vm211_vm1, %v1285_v18, 0.0  ;;  %v1292_v19 = vsel %vm211_vm1, %v1282_v56, 0.0  ;;  %v1295_v51 = vsel %vm211_vm1, %v1283_v54, 0.0  ;;  %v1289_v21 = vsel %vm211_vm1, %v1281_v20, 0.0 }
 0x44f   :  { %1305 = vadd.xlane.f32.xlu0 %v1304_v16  ;;  %1299 = vadd.xlane.f32.xlu1 %v1298_v17 }
 0x453   :  { %1302 = vadd.xlane.f32.xlu0 %v1301_v55  ;;  %1293 = vadd.xlane.f32.xlu1 %v1292_v19 }
 0x457   :  { %1296 = vadd.xlane.f32.xlu0 %v1295_v51 }
 0x45b   :  { %1290 = vadd.xlane.f32.xlu0 %v1289_v21 }
 0x4d4   :  { %v1312_v52 = vpop.xlane.xlu0 %1311  ;;  %v1309_v47 = vpop.xlane.xlu1 %1308 }
 0x4d5   :  { %2404 = vrcp.f32 %v1312_v52 }
 0x4d6   :  { %2406 = vrcp.f32 %v1309_v47 }
 0x4d8   :  { %v1306_v22 = vpop.xlane.xlu0 %1305  ;;  %v1300_v23 = vpop.xlane.xlu1 %1299 }
 0x4d9   :  { %2408 = vrcp.f32 %v1306_v22  ;;  %v1446_v22 = vld [vmem:[%s3069_s4 + $0x8] sm:$0xff] }
 0x4da   :  { %2410 = vrcp.f32 %v1300_v23  ;;  %v1447_v23 = vld [vmem:[%s3069_s4 + $0x10] sm:$0xff] }
 0x4dc   :  { %v1303_v25 = vpop.xlane.xlu0 %1302  ;;  %v1294_v48 = vpop.xlane.xlu1 %1293 }
 0x4dd   :  { %2412 = vrcp.f32 %v1303_v25  ;;  %v1448_v25 = vld [vmem:[%s3069_s4 + $0x18] sm:$0xff] }
 0x4de   :  { %2414 = vrcp.f32 %v1294_v48  ;;  %v1618_v48 = vld [vmem:[%s3080_s15 + $0x18] sm:$0xff] }
 0x4e0   :  { %v1297_v26 = vpop.xlane.xlu0 %1296 }
 0x4e1   :  { %2416 = vrcp.f32 %v1297_v26  ;;  %v1617_v26 = vld [vmem:[%s3080_s15 + $0x10] sm:$0xff] }
 0x4e2   :  { %v2405_v27 = vpop.eup %2404 }
 0x4e3   :  { %v2407_v24 = vpop.eup %2406  ;;  %v1328_v28 = vmul.f32 %v2405_v27, %v2942_v4  ;;  %v1616_v27 = vld [vmem:[%s3080_s15 + $0x8] sm:$0xff] }
 0x4e4   :  { %v1291_v29 = vpop.xlane.xlu0 %1290  ;;  %v1326_v30 = vmul.f32 %v2407_v24, %v2933_v7  ;;  %v1615_v24 = vld [vmem:[%s3080_s15] sm:$0xff] }
 0x4e5   :  { %2418 = vrcp.f32 %v1291_v29  ;;  %1486 = vperm.xlu1 %2387, %v1328_v28  }
 0x4e6   :  { %v2409_v31 = vpop.eup %2408  ;;  %1481 = vperm.xlu0 %2386, %v1326_v30  }
 0x4e7   :  { %v2411_v32 = vpop.eup %2410  ;;  %v1324_v34 = vmul.f32 %v2409_v31, %v2939_v3 }
 0x4e8   :  { %v1320_v35 = vmul.f32 %v2411_v32, %v2935_v15  ;;  %v1445_v15 = vld [vmem:[%s3069_s4] sm:$0xff] }
 0x4e9   :  { %1476 = vperm.xlu1 %2387, %v1324_v34   ;;  %2337 = vmatprep.mubr.msk.f32.mxu0 %vm1497_vm2, %v1445_v15 }
 0x4ea   :  { %v2413_v36 = vpop.eup %2412  ;;  %1466 = vperm.xlu0 %2386, %v1320_v35  }
 0x4eb   :  { %v2415_v37 = vpop.eup %2414  ;;  %v1322_v38 = vmul.f32 %v2413_v36, %v2927_v53  ;;  %v2311_v53 = vpop.f32.mrf.mxu1 }
 0x4ec   :  { %v1316_v4 = vmul.f32 %v2415_v37, %v2921_v63 }
 0x4ed   :  { %1471 = vperm.xlu1 %2387, %v1322_v38   ;;  %v1406_v3 = vpop.f32.mrf.mxu1 }
 0x4ee   :  { %v2417_v40 = vpop.eup %2416  ;;  %1456 = vperm.xlu0 %2386, %v1316_v4  }
 0x4ef   :  { %v1318_v7 = vmul.f32 %v2417_v40, %v2929_v2  ;;  %v2314_v63 = vpop.f32.mrf.mxu1  ;;  %v2043_v2 = vld [vmem:[%s3079_s14] ss:$0 sm:$0xff] }
 0x4f0   :  { %v1422_v16 = vadd.f32 %v2314_v63, %v2043_v2  ;;  %v1412_v54 = vadd.f32 %v2311_v53, %v2043_v2  ;;  %v1407_v20 = vadd.f32 %v2043_v2, %v1406_v3 }
 0x4f1   :  { %1461 = vperm.xlu1 %2387, %v1318_v7   ;;  %v1416_v49 = vpop.f32.mrf.mxu1 }
 0x4f2   :  { %v2419_v41 = vpop.eup %2418  ;;  %v1417_v18 = vadd.f32 %v2043_v2, %v1416_v49 }
 0x4f3   :  { %v1314_v43 = vmul.f32 %v2419_v41, %v2923_v1  ;;  %v2317_v50 = vpop.f32.mrf.mxu1 }
 0x4f4   :  { %v1432_v6 = vadd.f32 %v2317_v50, %v2043_v2 }
 0x4f5   :  { %1451 = vperm.xlu1 %2387, %v1314_v43   ;;  %v1426_v57 = vpop.f32.mrf.mxu1 }
 0x4f6   :  { %v1427_v8 = vadd.f32 %v2043_v2, %v1426_v57 }
 0x4f7   :  { %v2320_v58 = vpop.f32.mrf.mxu1 }
 0x4f8   :  { %v1442_v33 = vadd.f32 %v2320_v58, %v2043_v2  ;;  %v2065_v58 = vld [vmem:[%s3083_s18] ss:$0 sm:$0xff]  ;;  %s2477_s18 = smov 96  }
 0x4f9   :  { %v1436_v1 = vpop.f32.mrf.mxu1 }
 0x4fa   :  { %v1437_v59 = vadd.f32 %v2043_v2, %v1436_v1 }
 0x4fb   :  { %v2370_v2 = vpop.f32.mrf.mxu1 }
 0x560   :  { %v1487_v45 = vpop.permute.xlu1 %1486 }
 0x561   :  { %v1496_v60 = vmul.f32 %v1487_v45, %v1442_v33  ;;  %v1482_v61 = vpop.permute.xlu0 %1481 }
 0x562   :  { %v1495_v0 = vmul.f32 %v1482_v61, %v1437_v59  ;;  %v1828_v59 = vadd.f32 %v2370_v2, %v2065_v58  ;;  %v2060_v61 = vld [vmem:[%s3082_s17] ss:$0 sm:$0xff]  ;;  %s2476_s17 = smov 32  }
 0x563   :  { %2321 = vmatprep.subr.mxu0 %v1496_v60 }
 0x564   :  { %2322 = vmatpush3.msra.mxu0 %v1496_v60  ;;  %v1477_v62 = vpop.permute.xlu1 %1476 }
 0x565   :  { %v1494_v14 = vmul.f32 %v1477_v62, %v1432_v6  ;;  %2323 = vmatprep.subr.mxu0 %v1495_v0  ;;  %v1467_v5 = vpop.permute.xlu0 %1466 }
 0x566   :  { %2324 = vmatpush3.msra.mxu0 %v1495_v0  ;;  %v1492_v56 = vmul.f32 %v1467_v5, %v1422_v16 }
 0x567   :  { %2325 = vmatprep.subr.mxu0 %v1494_v14 }
 0x568   :  { %v1472_v9 = vpop.permute.xlu1 %1471  ;;  %2326 = vmatpush3.msra.mxu0 %v1494_v14 }
 0x569   :  { %v1493_v17 = vmul.f32 %v1472_v9, %v1427_v8  ;;  %v1457_v55 = vpop.permute.xlu0 %1456 }
 0x56a   :  { %v1490_v21 = vmul.f32 %v1457_v55, %v1412_v54 }
 0x56b   :  { %2327 = vmatprep.subr.mxu0 %v1493_v17 }
 0x56c   :  { %v1462_v19 = vpop.permute.xlu1 %1461  ;;  %2328 = vmatpush3.msra.mxu0 %v1493_v17 }
 0x56d   :  { %v1491_v51 = vmul.f32 %v1462_v19, %v1417_v18  ;;  %2329 = vmatprep.subr.mxu0 %v1492_v56 }
 0x56e   :  { %2330 = vmatpush3.msra.mxu0 %v1492_v56 }
 0x56f   :  { %2331 = vmatprep.subr.mxu0 %v1491_v51 }
 0x570   :  { %v1452_v52 = vpop.permute.xlu1 %1451  ;;  %2332 = vmatpush3.msra.mxu0 %v1491_v51 }
 0x571   :  { %v1489_v47 = vmul.f32 %v1452_v52, %v1407_v20  ;;  %2333 = vmatprep.subr.mxu0 %v1490_v21 }
 0x572   :  { %2334 = vmatpush3.msra.mxu0 %v1490_v21 }
 0x573   :  { %2335 = vmatprep.subr.mxu0 %v1489_v47 }
 0x574   :  { %2336 = vmatpush3.msra.mxu0 %v1489_v47 }
 0x575   :  { %2338 = vmatmul.mubr.msk.f32.vlgmr.msra.gmra.mxu0 %vm1497_vm2, %v1446_v22  ;;  %2343 = vmatprep.subr.mxu0 %v1618_v48 }
 0x576   :  { %2340 = vmatprep.mubr.msk.f32.mxu0 %vm1497_vm2, %v1447_v23  ;;  %2344 = vmatpush3.msra.mxu0 %v1618_v48 }
 0x577   :  { %2345 = vmatprep.subr.mxu0 %v1617_v26 }
 0x578   :  { %2346 = vmatpush3.msra.mxu0 %v1617_v26 }
 0x579   :  { %2341 = vmatmul.mubr.msk.f32.gmra.mxu0 %vm1497_vm2, %v1448_v25  ;;  %2347 = vmatprep.subr.mxu0 %v1616_v27 }
 0x57a   :  { %2348 = vmatpush3.msra.mxu0 %v1616_v27 }
 0x57b   :  { %2349 = vmatprep.subr.mxu0 %v1615_v24 }
 0x57c   :  { %2350 = vmatpush3.msra.mxu0 %v1615_v24 }
 0x57d   :  { %2357 = vmatprep.subr.mxu0 %v2817_v10 }
 0x635   :  { %v2339_v28 = vpop.f32.mrf.mxu0 }
 0x636   :  { %v1601_v29 = vmul.f32 1.442695, %v2339_v28  ;;  %vm1596_vm4 = vcmp.gt.f32.partialorder %v2339_v28, 0.0 }
 0x637   :  { %v1576_v30 = vpop.f32.mrf.mxu0 }
 0x638   :  { %2420 = vpow2.f32 %v1601_v29  ;;  %v1599_v31 = vmul.f32 1.442695, %v1576_v30  ;;  %vm1595_vm3 = vcmp.gt.f32.partialorder %v1576_v30, 0.0 }
 0x639   :  { %v2342_v32 = vpop.f32.mrf.mxu0 }
 0x63a   :  { %2422 = vpow2.f32 %v1599_v31  ;;  %v1605_v34 = vmul.f32 1.442695, %v2342_v32  ;;  %vm1598_vm6 = vcmp.gt.f32.partialorder %v2342_v32, 0.0 }
 0x63b   :  { %v1586_v35 = vpop.f32.mrf.mxu0 }
 0x63c   :  { %2424 = vpow2.f32 %v1605_v34  ;;  %v1603_v36 = vmul.f32 1.442695, %v1586_v35  ;;  %vm1597_vm5 = vcmp.gt.f32.partialorder %v1586_v35, 0.0 }
 0x63e   :  { %2426 = vpow2.f32 %v1603_v36 }
 0x645   :  { %v2421_v37 = vpop.eup %2420 }
 0x646   :  { %v2057_v4 = vadd.f32 -1.0, %v2421_v37 }
 0x647   :  { %v2423_v38 = vpop.eup %2422 }
 0x648   :  { %v2056_v40 = vadd.f32 -1.0, %v2423_v38  ;;  %v1612_v15 = vsel %vm1596_vm4, %v2339_v28, %v2057_v4 }
 0x649   :  { %v2425_v7 = vpop.eup %2424 }
 0x64a   :  { %v1611_v41 = vsel %vm1595_vm3, %v1576_v30, %v2056_v40  ;;  %v2059_v53 = vadd.f32 -1.0, %v2425_v7 }
 0x64b   :  { %v2427_v43 = vpop.eup %2426  ;;  %2351 = vmatprep.mubr.msk.f32.mxu0 %vm211_vm1, %v1611_v41 }
 0x64c   :  { %v2058_v3 = vadd.f32 -1.0, %v2427_v43  ;;  %2352 = vmatmul.mubr.msk.f32.vlgmr.msra.gmra.mxu0 %vm211_vm1, %v1612_v15  ;;  %v1614_v49 = vsel %vm1598_vm6, %v2342_v32, %v2059_v53 }
 0x64d   :  { %2358 = vmatpush3.msra.mxu0 %v2817_v10 }
 0x64e   :  { %2359 = vmatprep.subr.mxu0 %v2826_v11  ;;  %v1613_v63 = vsel %vm1597_vm5, %v1586_v35, %v2058_v3 }
 0x64f   :  { %2354 = vmatprep.mubr.msk.f32.mxu0 %vm211_vm1, %v1613_v63  ;;  %2360 = vmatpush3.msra.mxu0 %v2826_v11 }
 0x650   :  { %2355 = vmatmul.mubr.msk.f32.gmra.mxu0 %vm211_vm1, %v1614_v49  ;;  %2361 = vmatprep.subr.mxu0 %v2835_v12 }
 0x651   :  { %2362 = vmatpush3.msra.mxu0 %v2835_v12  ;;  %2365 = vmatprep.mubr.msk.f32.mxu0 %vm211_vm1, %v2699_v46 }
 0x652   :  { %2363 = vmatprep.subr.mxu0 %v2842_v13 }
 0x653   :  { %2364 = vmatpush3.msra.mxu0 %v2842_v13  ;;  %v1822_v13 = vpop.f32.mrf.mxu1 }
 0x654   :  { %2366 = vmatmul.mubr.msk.f32.vlgmr.msra.gmra.mxu0 %vm211_vm1, %v2693_v44  ;;  %v1823_v60 = vadd.f32 %v2065_v58, %v1822_v13 }
 0x70c   :  { %v2353_v10 = vpop.f32.mrf.mxu0 }
 0x70d   :  { %v1715_v6 = vadd.f32 %v2353_v10, %v2060_v61 }
 0x70e   :  { %v1709_v50 = vpop.f32.mrf.mxu0 }
 0x70f   :  { %v1710_v0 = vadd.f32 %v2060_v61, %v1709_v50 }
 0x710   :  { %v2356_v11 = vpop.f32.mrf.mxu0 }
 0x711   :  { %v1725_v62 = vadd.f32 %v2356_v11, %v2060_v61 }
 0x712   :  { %v1719_v57 = vpop.f32.mrf.mxu0 }
 0x713   :  { %v1720_v5 = vadd.f32 %v2060_v61, %v1719_v57  ;;  %v1834_v9 = vadd.f32 %v1828_v59, %v1725_v62 }
 0x714   :  { %v2367_v12 = vpop.f32.mrf.mxu0 }
 0x715   :  { %v1818_v1 = vadd.f32 %v2367_v12, %v2065_v58  ;;  %v1833_v17 = vadd.f32 %v1823_v60, %v1720_v5  ;;  %v2073_v56 = vmul.f32 -1.442695, %v1834_v9 }
 0x716   :  { %v1812_v33 = vpop.f32.mrf.mxu0 }
 0x717   :  { %v1813_v45 = vadd.f32 %v2065_v58, %v1812_v33  ;;  %1865 = vrot.lane.b32.xlu1 %v1818_v1, %s2475_s21  ;;  %v1832_v14 = vadd.f32 %v1818_v1, %v1715_v6  ;;  %v2072_v55 = vmul.f32 -1.442695, %v1833_v17 }
 0x719   :  { %1863 = vrot.lane.b32.xlu0 %v1813_v45, %s2475_s21  ;;  %v1831_v8 = vadd.f32 %v1813_v45, %v1710_v0  ;;  %v2071_v16 = vmul.f32 -1.442695, %v1832_v14 }
 0x71b   :  { %1869 = vrot.lane.b32.xlu1 %v1828_v59, %s2475_s21  ;;  %v2070_v18 = vmul.f32 -1.442695, %v1831_v8  ;;  %2428 = vpow2.f32 %v2071_v16 }
 0x71d   :  { %1867 = vrot.lane.b32.xlu0 %v1823_v60, %s2475_s21  ;;  %2430 = vpow2.f32 %v2070_v18 }
 0x71e   :  { %2432 = vpow2.f32 %v2073_v56 }
 0x71f   :  { %2434 = vpow2.f32 %v2072_v55 }
 0x728   :  { %v2429_v19 = vpop.eup %2428 }
 0x729   :  { %v1848_v51 = vadd.f32 1.0, %v2429_v19 }
 0x72a   :  { %v2431_v54 = vpop.eup %2430 }
 0x72b   :  { %v2433_v20 = vpop.eup %2432  ;;  %v1847_v21 = vadd.f32 1.0, %v2431_v54  ;;  %2436 = vrcp.f32 %v1848_v51 }
 0x72c   :  { %v2435_v52 = vpop.eup %2434  ;;  %v1850_v47 = vadd.f32 1.0, %v2433_v20 }
 0x72d   :  { %v1849_v22 = vadd.f32 1.0, %v2435_v52  ;;  %2438 = vrcp.f32 %v1847_v21 }
 0x72e   :  { %2440 = vrcp.f32 %v1850_v47 }
 0x72f   :  { %2442 = vrcp.f32 %v1849_v22 }
 0x738   :  { %v2437_v23 = vpop.eup %2436 }
 0x739   :  { %v1904_v10 = vsub.f32 1.0, %v2437_v23 }
 0x73a   :  { %v2439_v26 = vpop.eup %2438 }
 0x73b   :  { %v2441_v28 = vpop.eup %2440  ;;  %v1903_v58 = vsub.f32 1.0, %v2439_v26 }
 0x73c   :  { %v2443_v31 = vpop.eup %2442  ;;  %v1906_v1 = vsub.f32 1.0, %v2441_v28 }
 0x73d   :  { %v1905_v13 = vsub.f32 1.0, %v2443_v31 }
 0x789   :  { %v1866_v25 = vpop.permute.xlu1 %1865 }
 0x78a   :  { %v1876_v48 = vmul.f32 %v2437_v23, %v1866_v25 }
 0x78b   :  { %v1864_v27 = vpop.permute.xlu0 %1863 }
 0x78c   :  { %v1875_v24 = vmul.f32 %v2439_v26, %v1864_v27  ;;  %1885 = vrot.lane.b32.xlu1 %v1876_v48, %s2475_s21 }
 0x78d   :  { %v1870_v29 = vpop.permute.xlu1 %1869 }
 0x78e   :  { %v1878_v30 = vmul.f32 %v2441_v28, %v1870_v29  ;;  %1883 = vrot.lane.b32.xlu0 %v1875_v24, %s2475_s21 }
 0x78f   :  { %v1868_v32 = vpop.permute.xlu0 %1867 }
 0x790   :  { %v1877_v34 = vmul.f32 %v2443_v31, %v1868_v32  ;;  %1889 = vrot.lane.b32.xlu1 %v1878_v30, %s2475_s21 }
 0x792   :  { %1887 = vrot.lane.b32.xlu0 %v1877_v34, %s2475_s21 }
 0x794   :  { %1929 = vrot.lane.b32.xlu1 %v2693_v44, %s2476_s17 }
 0x796   :  { %1927 = vrot.lane.b32.xlu0 %v2699_v46, %s2476_s17 }
 0x7fe   :  { %v1886_v35 = vpop.permute.xlu1 %1885 }
 0x7ff   :  { %v1896_v40 = vadd.f32 %v1886_v35, %v1715_v6 }
 0x800   :  { %v1884_v36 = vpop.permute.xlu0 %1883 }
 0x801   :  { %v1895_v41 = vadd.f32 %v1884_v36, %v1710_v0 }
 0x802   :  { %v1890_v37 = vpop.permute.xlu1 %1889 }
 0x803   :  { %v1898_v38 = vadd.f32 %v1890_v37, %v1725_v62 }
 0x804   :  { %v1888_v4 = vpop.permute.xlu0 %1887 }
 0x805   :  { %2444 = vtanh.f32 %v1898_v38  ;;  %v1897_v7 = vadd.f32 %v1888_v4, %v1720_v5 }
 0x806   :  { %v1930_v53 = vpop.permute.xlu1 %1929 }
 0x807   :  { %2446 = vtanh.f32 %v1897_v7  ;;  %v1940_v11 = vmul.f32 %v2437_v23, %v1930_v53 }
 0x808   :  { %2448 = vtanh.f32 %v1896_v40  ;;  %v1928_v3 = vpop.permute.xlu0 %1927 }
 0x809   :  { %2450 = vtanh.f32 %v1895_v41  ;;  %v1939_v12 = vmul.f32 %v2439_v26, %v1928_v3 }
 0x812   :  { %v2445_v43 = vpop.eup %2444 }
 0x813   :  { %1917 = vrot.lane.b32.xlu1 %v2445_v43, %s2477_s18 }
 0x814   :  { %v2447_v15 = vpop.eup %2446 }
 0x815   :  { %1915 = vrot.lane.b32.xlu0 %v2447_v15, %s2477_s18  ;;  %v2449_v44 = vpop.eup %2448 }
 0x816   :  { %v2451_v46 = vpop.eup %2450 }
 0x817   :  { %1913 = vrot.lane.b32.xlu1 %v2449_v44, %s2477_s18 }
 0x819   :  { %1911 = vrot.lane.b32.xlu0 %v2451_v46, %s2477_s18 }
 0x81b   :  { %1933 = vrot.lane.b32.xlu1 %v2683_v39, %s2476_s17 }
 0x81d   :  { %1931 = vrot.lane.b32.xlu0 %v2689_v42, %s2476_s17 }
 0x885   :  { %v1918_v63 = vpop.permute.xlu1 %1917 }
 0x886   :  { %v1926_v60 = vmul.f32 %v1918_v63, %v1906_v1 }
 0x887   :  { %v1916_v49 = vpop.permute.xlu0 %1915 }
 0x888   :  { %v1925_v0 = vmul.f32 %v1916_v49, %v1905_v13 }
 0x889   :  { %v1914_v50 = vpop.permute.xlu1 %1913 }
 0x88a   :  { %v1924_v57 = vmul.f32 %v1914_v50, %v1904_v10 }
 0x88b   :  { %v1912_v2 = vpop.permute.xlu0 %1911 }
 0x88c   :  { %v1944_v33 = vadd.f32 %v1940_v11, %v1924_v57  ;;  %v1923_v45 = vmul.f32 %v1912_v2, %v1903_v58 }
 0x88d   :  { %v1934_v59 = vpop.permute.xlu1 %1933 }
 0x88e   :  { %v1948_v39 = vmax.f32 %v1944_v33, 0.0  ;;  %v1943_v61 = vadd.f32 %v1939_v12, %v1923_v45  ;;  %v1942_v42 = vmul.f32 %v2441_v28, %v1934_v59 }
 0x88f   :  { %v1932_v6 = vpop.permute.xlu0 %1931 }
 0x890   :  { %v1947_v62 = vmax.f32 %v1943_v61, 0.0  ;;  %v1946_v14 = vadd.f32 %v1942_v42, %v1926_v60  ;;  %v1941_v5 = vmul.f32 %v2443_v31, %v1932_v6  ;;  %1957 = vrot.lane.b32.xlu1 %v1948_v39, %s2477_s18 }
 0x892   :  { %v1950_v8 = vmax.f32 %v1946_v14, 0.0  ;;  %v1945_v9 = vadd.f32 %v1941_v5, %v1925_v0  ;;  %1955 = vrot.lane.b32.xlu0 %v1947_v62, %s2477_s18 }
 0x894   :  { %v1949_v16 = vmax.f32 %v1945_v9, 0.0  ;;  %1961 = vrot.lane.b32.xlu1 %v1950_v8, %s2477_s18 }
 0x896   :  { %1959 = vrot.lane.b32.xlu0 %v1949_v16, %s2477_s18 }
 0x902   :  { %v1958_v17 = vpop.permute.xlu1 %1957 }
 0x903   :  { %1968 = vst.msk [vmem:[#allocation3 + $0x8] sm:$0xff] %vm211_vm1, %v1958_v17 }
 0x904   :  { %v1956_v18 = vpop.permute.xlu0 %1955 }
 0x905   :  { %1967 = vst.msk [vmem:[#allocation3] sm:$0xff] %vm211_vm1, %v1956_v18 }
 0x906   :  { %v1962_v56 = vpop.permute.xlu1 %1961 }
 0x907   :  { %1970 = vst.msk [vmem:[#allocation3 + $0x18] sm:$0xff] %vm211_vm1, %v1962_v56 }
 0x908   :  { %v1960_v55 = vpop.permute.xlu0 %1959 }
 0x909   :  { %1969 = vst.msk [vmem:[#allocation3 + $0x10] sm:$0xff] %vm211_vm1, %v1960_v55 }
 0x90a   :  { %2463 = shalt.err (!%p2460_p4)
}
 0x90b   :  { %s2479_s1 = smov 128   ;;  %s2480_s8 = smov 8  }
 0x90c   :  { %1982 = dma.vmem_to_hbm [thread:$0]  %s1977_s20, 512, %s3084_s19, [#allocation4], %s2479_s1, %s2479_s1, %s2480_s8  }
 0x90d   :  { %2472 = dma.done.wait [#allocation4], 512  }
 0x90e   :  { %2473 = vsyncadd [#allocation4], 4294966784 }
 0x90f   :  { %1986 = vsyncpa [#allocation4], 1 }

</bundles_post_ra>
